<compile_context>
chip_gen: v7x
topology: tpu7x:2x2x1
jax: 0.10.0
libtpu: 0.0.40
codegen_flags: <defaults>
</compile_context>

<pallas_src>
import functools
import math

import jax
import jax.numpy as jnp
from jax.experimental import pallas as pl
from jax.experimental.pallas import tpu as pltpu

LN_EPS = 1e-12                 # BERT LayerNorm eps
_INV_SQRT2 = 1.0 / math.sqrt(2.0)

# Flip to True on v6e/v7x to feed the MXU bf16 operands (f32 accumulation,
# softmax / LayerNorm / GELU stay in f32). Kept False here to match the f32
# PyTorch reference bit-for-bit in spirit.
USE_BF16_MXU = False


def _pick_tile(dim, target, align):
    """Largest tile <= target that divides dim, preferring multiples of `align`.
    If dim <= target the full extent is used (always a legal block)."""
    if dim <= target:
        return dim
    t = (target // align) * align
    while t >= align:
        if dim % t == 0:
            return t
        t -= align
    return dim  # fall back to a single full-extent block


def _gelu(x):
    # exact (erf-based) GELU, matching transformers' default hidden_act="gelu"
    return 0.5 * x * (1.0 + jax.lax.erf(x * _INV_SQRT2))


# ---------------------------------------------------------------------------
# Fused tiled linear: y = act(x @ W + b), optionally split into several outputs
# (used to emit Q/K/V or K/V from a single fused weight matrix in one call).
# ---------------------------------------------------------------------------
def _fused_linear_kernel(x_ref, w_ref, b_ref, *rest, activation, splits, bf16):
    o_refs, acc_ref = rest[:-1], rest[-1]
    k_idx = pl.program_id(2)

    @pl.when(k_idx == 0)
    def _init():
        acc_ref[...] = jnp.zeros_like(acc_ref)

    x = x_ref[...]
    w = w_ref[...]
    if bf16:
        x = x.astype(jnp.bfloat16)
        w = w.astype(jnp.bfloat16)
    acc_ref[...] += jnp.dot(x, w, preferred_element_type=jnp.float32)

    @pl.when(k_idx == pl.num_programs(2) - 1)
    def _finalize():
        y = acc_ref[...] + b_ref[...]
        if activation == "gelu":
            y = _gelu(y)
        if splits is None:
            o_refs[0][...] = y.astype(o_refs[0].dtype)
        else:
            off = 0
            for o_ref, width in zip(o_refs, splits):
                o_ref[...] = y[:, off:off + width].astype(o_ref.dtype)
                off += width


def fused_linear(x2d, w, b, activation=None, out_splits=None, use_bf16=USE_BF16_MXU):
    M, K = x2d.shape
    N = w.shape[1]
    tm = _pick_tile(M, 256, 8)
    tk = _pick_tile(K, 512, 128)

    if out_splits is None:
        tn = _pick_tile(N, 256, 128)
        out_shape = jax.ShapeDtypeStruct((M, N), x2d.dtype)
        out_specs = pl.BlockSpec((tm, tn), lambda i, j, k: (i, j))
    else:
        assert sum(out_splits) == N
        tn = N  # keep the fused width resident; split lanes in the epilogue
        out_shape = tuple(jax.ShapeDtypeStruct((M, width), x2d.dtype)
                          for width in out_splits)
        out_specs = tuple(pl.BlockSpec((tm, width), lambda i, j, k: (i, 0))
                          for width in out_splits)

    grid = (M // tm, N // tn, K // tk)
    return pl.pallas_call(
        functools.partial(_fused_linear_kernel, activation=activation,
                          splits=out_splits, bf16=use_bf16),
        out_shape=out_shape,
        grid=grid,
        in_specs=[
            pl.BlockSpec((tm, tk), lambda i, j, k: (i, k)),
            pl.BlockSpec((tk, tn), lambda i, j, k: (k, j)),
            pl.BlockSpec((1, tn), lambda i, j, k: (0, j)),
        ],
        out_specs=out_specs,
        scratch_shapes=[pltpu.VMEM((tm, tn), jnp.float32)],
        compiler_params=pltpu.CompilerParams(
            dimension_semantics=("parallel", "parallel", "arbitrary")),
    )(x2d, w, b.reshape(1, N))


# ---------------------------------------------------------------------------
# Fused attention block:
#   multi-head attention + output projection + bias + residual + LayerNorm.
# ---------------------------------------------------------------------------
def _attention_block_kernel(q_ref, k_ref, v_ref, mask_ref, wo_ref, bo_ref,
                            res_ref, g_ref, be_ref, o_ref, ctx_ref,
                            *, num_heads, head_dim, eps):
    # q_ref: (1,Tq,H)  k_ref/v_ref: (1,Sk,H)  mask_ref: (1,1,Sk) additive f32
    # wo_ref: (H,H)  bo_ref/g_ref/be_ref: (1,H)  res_ref/o_ref: (1,Tq,H)
    # ctx_ref: VMEM scratch (Tq,H) f32 — the concatenated-head context.
    scale = 1.0 / math.sqrt(head_dim)
    q = q_ref[0] * scale                       # fold 1/sqrt(d) into q once
    k = k_ref[0]
    v = v_ref[0]
    tq, sk = q.shape[0], k.shape[0]

    # Hoist the additive-mask broadcast out of the head loop (no per-head
    # broadcast_in_dim re-emission).
    mask_b = jnp.broadcast_to(mask_ref[0], (tq, sk))

    for h in range(num_heads):                 # static unroll over heads
        sl = slice(h * head_dim, (h + 1) * head_dim)
        qh, kh, vh = q[:, sl], k[:, sl], v[:, sl]
        # Contract head_dim of q and k directly — no explicit transpose (XLU-free).
        scores = jax.lax.dot_general(
            qh, kh, (((1,), (1,)), ((), ())),
            preferred_element_type=jnp.float32)
        scores = scores + mask_b
        m = jnp.max(scores, axis=-1, keepdims=True)
        p = jnp.exp(scores - m)
        l = jnp.sum(p, axis=-1, keepdims=True)
        ctx_h = jnp.dot(p, vh, preferred_element_type=jnp.float32)
        # EUP reciprocal instead of a VALU divide; write head context directly
        # into its lane slice of the VMEM slab (no concatenate).
        ctx_ref[:, sl] = ctx_h * pl.reciprocal(l, approx=True)
    # TODO(synk): for long Sk add a Sk grid axis with flash-style online softmax.

    # Fused epilogue: output projection + bias + residual + LayerNorm (all in VMEM).
    proj = jnp.dot(ctx_ref[...], wo_ref[...],
                   preferred_element_type=jnp.float32) + bo_ref[...]
    x = proj + res_ref[0].astype(jnp.float32)
    mean = jnp.mean(x, axis=-1, keepdims=True)
    c = x - mean
    var = jnp.mean(c * c, axis=-1, keepdims=True)
    y = c * jax.lax.rsqrt(var + eps)
    o_ref[0] = (y * g_ref[...] + be_ref[...]).astype(o_ref.dtype)


def attention_block(q, k, v, mask, wo, bo, residual, gamma, beta,
                    num_heads, eps=LN_EPS):
    B, Sq, H = q.shape
    Sk = k.shape[1]
    head_dim = H // num_heads
    tq = _pick_tile(Sq, 256, 8)
    grid = (B, Sq // tq)
    return pl.pallas_call(
        functools.partial(_attention_block_kernel, num_heads=num_heads,
                          head_dim=head_dim, eps=eps),
        out_shape=jax.ShapeDtypeStruct((B, Sq, H), q.dtype),
        grid=grid,
        in_specs=[
            pl.BlockSpec((1, tq, H), lambda b, qi: (b, qi, 0)),   # q
            pl.BlockSpec((1, Sk, H), lambda b, qi: (b, 0, 0)),    # k
            pl.BlockSpec((1, Sk, H), lambda b, qi: (b, 0, 0)),    # v
            pl.BlockSpec((1, 1, Sk), lambda b, qi: (b, 0, 0)),    # additive mask
            pl.BlockSpec((H, H), lambda b, qi: (0, 0)),           # wo
            pl.BlockSpec((1, H), lambda b, qi: (0, 0)),           # bo
            pl.BlockSpec((1, tq, H), lambda b, qi: (b, qi, 0)),   # residual
            pl.BlockSpec((1, H), lambda b, qi: (0, 0)),           # ln gamma
            pl.BlockSpec((1, H), lambda b, qi: (0, 0)),           # ln beta
        ],
        out_specs=pl.BlockSpec((1, tq, H), lambda b, qi: (b, qi, 0)),
        scratch_shapes=[pltpu.VMEM((tq, H), jnp.float32)],
        compiler_params=pltpu.CompilerParams(
            dimension_semantics=("parallel", "parallel")),
    )(q, k, v, mask, wo, bo.reshape(1, H), residual,
      gamma.reshape(1, H), beta.reshape(1, H))


# ---------------------------------------------------------------------------
# Fused FFN: intermediate dense + GELU + output dense + bias + residual + LN.
# The (tm, intermediate) activation stays in VMEM; the intermediate dimension
# is chunked on an "arbitrary" grid axis with a VMEM f32 accumulator.
# ---------------------------------------------------------------------------
def _fused_ffn_kernel(x_ref, w1_ref, b1_ref, w2_ref, b2_ref, g_ref, be_ref,
                      o_ref, acc_ref, *, eps, bf16):
    j = pl.program_id(1)

    @pl.when(j == 0)
    def _init():
        acc_ref[...] = jnp.zeros_like(acc_ref)

    x = x_ref[...]                              # (tm, H)
    xm = x.astype(jnp.bfloat16) if bf16 else x
    w1 = w1_ref[...]
    w2 = w2_ref[...]
    if bf16:
        w1 = w1.astype(jnp.bfloat16)
        w2 = w2.astype(jnp.bfloat16)

    h = jnp.dot(xm, w1, preferred_element_type=jnp.float32) + b1_ref[...]
    h = _gelu(h)                                # f32 elementwise
    hm = h.astype(jnp.bfloat16) if bf16 else h
    acc_ref[...] += jnp.dot(hm, w2, preferred_element_type=jnp.float32)

    @pl.when(j == pl.num_programs(1) - 1)
    def _finalize():
        y = acc_ref[...] + b2_ref[...] + x.astype(jnp.float32)   # residual = FFN input
        mean = jnp.mean(y, axis=-1, keepdims=True)
        c = y - mean
        var = jnp.mean(c * c, axis=-1, keepdims=True)
        yn = c * jax.lax.rsqrt(var + eps)
        o_ref[...] = (yn * g_ref[...] + be_ref[...]).astype(o_ref.dtype)


def fused_ffn(x2d, w1, b1, w2, b2, gamma, beta, eps=LN_EPS, use_bf16=USE_BF16_MXU):
    M, H = x2d.shape
    I = w1.shape[1]
    tm = _pick_tile(M, 256, 8)
    ik = _pick_tile(I, 512, 128)
    grid = (M // tm, I // ik)
    return pl.pallas_call(
        functools.partial(_fused_ffn_kernel, eps=eps, bf16=use_bf16),
        out_shape=jax.ShapeDtypeStruct((M, H), x2d.dtype),
        grid=grid,
        in_specs=[
            pl.BlockSpec((tm, H), lambda i, j: (i, 0)),    # x (and residual)
            pl.BlockSpec((H, ik), lambda i, j: (0, j)),    # w1 chunk
            pl.BlockSpec((1, ik), lambda i, j: (0, j)),    # b1 chunk
            pl.BlockSpec((ik, H), lambda i, j: (j, 0)),    # w2 chunk
            pl.BlockSpec((1, H), lambda i, j: (0, 0)),     # b2
            pl.BlockSpec((1, H), lambda i, j: (0, 0)),     # ln gamma
            pl.BlockSpec((1, H), lambda i, j: (0, 0)),     # ln beta
        ],
        out_specs=pl.BlockSpec((tm, H), lambda i, j: (i, 0)),
        scratch_shapes=[pltpu.VMEM((tm, H), jnp.float32)],
        compiler_params=pltpu.CompilerParams(
            dimension_semantics=("parallel", "arbitrary")),
    )(x2d, w1, b1.reshape(1, I), w2, b2.reshape(1, H),
      gamma.reshape(1, H), beta.reshape(1, H))


# ---------------------------------------------------------------------------
# Module glue (mask extension, parameter packing, block composition)
# ---------------------------------------------------------------------------
def get_extended_attention_mask(attention_mask):
    # 2-D (batch, src_len) padding mask -> additive (batch, 1, src_len) mask,
    # broadcast over heads and query positions inside the attention kernel.
    if attention_mask.ndim == 2:
        ext = attention_mask[:, None, :]
    else:
        # TODO(synk): 3-D per-query masks would need a (B, tq, Sk) mask block.
        raise NotImplementedError("only 2-D encoder_attention_mask supported")
    return (1.0 - ext) * -10000.0


def init_params(key, hidden, intermediate):
    """Init separate q/k/v/o Linear weights (as PyTorch would have them) and
    pack q/k/v (resp. k/v) once into fused weight matrices for the kernels."""
    def dense(k, din, dout):
        return (0.02 * jax.random.normal(k, (din, dout), jnp.float32),
                jnp.zeros((dout,), jnp.float32))

    ks = jax.random.split(key, 10)
    sq, sk_, sv, so = (dense(ks[i], hidden, hidden) for i in range(4))
    cq, ck, cv, co = (dense(ks[i], hidden, hidden) for i in range(4, 8))
    w1 = dense(ks[8], hidden, intermediate)
    w2 = dense(ks[9], intermediate, hidden)
    ones = jnp.ones((hidden,), jnp.float32)
    zeros = jnp.zeros((hidden,), jnp.float32)

    return dict(
        self_attn=dict(
            wqkv=jnp.concatenate([sq[0], sk_[0], sv[0]], axis=1),   # (H, 3H)
            bqkv=jnp.concatenate([sq[1], sk_[1], sv[1]]),           # (3H,)
            wo=so[0], bo=so[1], ln_g=ones, ln_b=zeros),
        cross_attn=dict(
            wq=cq[0], bq=cq[1],
            wkv=jnp.concatenate([ck[0], cv[0]], axis=1),            # (H, 2H)
            bkv=jnp.concatenate([ck[1], cv[1]]),                    # (2H,)
            wo=co[0], bo=co[1], ln_g=ones, ln_b=zeros),
        ffn=dict(w1=w1[0], b1=w1[1], w2=w2[0], b2=w2[1],
                 ln_g=ones, ln_b=zeros),
    )


def transformer_decoder_layer(params, hidden_states, encoder_hidden_states,
                              encoder_attention_mask, num_heads):
    B, S_dec, H = hidden_states.shape
    S_enc = encoder_hidden_states.shape[1]
    dt = hidden_states.dtype

    # ---- Self-attention: fused QKV matmul, then fused attn + o-proj + res + LN.
    sa = params["self_attn"]
    q, k, v = fused_linear(hidden_states.reshape(B * S_dec, H),
                           sa["wqkv"], sa["bqkv"], out_splits=(H, H, H))
    q = q.reshape(B, S_dec, H)
    k = k.reshape(B, S_dec, H)
    v = v.reshape(B, S_dec, H)
    zero_mask = jnp.zeros((B, 1, S_dec), dt)     # reference passes mask=None here
    attn_out = attention_block(q, k, v, zero_mask, sa["wo"], sa["bo"],
                               hidden_states, sa["ln_g"], sa["ln_b"], num_heads)

    # ---- Cross-attention: Q from decoder state, fused KV from encoder state.
    ca = params["cross_attn"]
    if encoder_attention_mask is not None:
        ext_mask = get_extended_attention_mask(encoder_attention_mask).astype(dt)
    else:
        ext_mask = jnp.zeros((B, 1, S_enc), dt)
    q_c = fused_linear(attn_out.reshape(B * S_dec, H),
                       ca["wq"], ca["bq"]).reshape(B, S_dec, H)
    k_c, v_c = fused_linear(encoder_hidden_states.reshape(B * S_enc, H),
                            ca["wkv"], ca["bkv"], out_splits=(H, H))
    k_c = k_c.reshape(B, S_enc, H)
    v_c = v_c.reshape(B, S_enc, H)
    cross_out = attention_block(q_c, k_c, v_c, ext_mask, ca["wo"], ca["bo"],
                                attn_out, ca["ln_g"], ca["ln_b"], num_heads)

    # ---- Fused FFN: intermediate dense + GELU + out dense + residual + LN.
    ffn = params["ffn"]
    layer_out = fused_ffn(cross_out.reshape(B * S_dec, H),
                          ffn["w1"], ffn["b1"], ffn["w2"], ffn["b2"],
                          ffn["ln_g"], ffn["ln_b"]).reshape(B, S_dec, H)

    # output_attentions defaults to False -> outputs tuple is (layer_output,)
    return (layer_out,)


if __name__ == "__main__":
    B, S_DEC, S_ENC = 2, 8, 8
    HIDDEN, HEADS, INTER = 32, 4, 64

    root = jax.random.PRNGKey(0)
    k_params, k_h, k_e = jax.random.split(root, 3)

    params = init_params(k_params, HIDDEN, INTER)
    hidden_states = jax.random.normal(k_h, (B, S_DEC, HIDDEN), jnp.float32)
    encoder_hidden_states = jax.random.normal(k_e, (B, S_ENC, HIDDEN), jnp.float32)
    # mask out the last two encoder positions of the second batch element
    encoder_attention_mask = jnp.array(
        [[1.0] * S_ENC, [1.0] * (S_ENC - 2) + [0.0, 0.0]], jnp.float32)

    fwd = jax.jit(functools.partial(transformer_decoder_layer, num_heads=HEADS))
    out = fwd(params, hidden_states, encoder_hidden_states, encoder_attention_mask)
    jax.block_until_ready(out)
    assert out[0].shape == (B, S_DEC, HIDDEN)
    print("KERNEL_OK")
</pallas_src>

<mosaic_0001>
module attributes {stable_mosaic.version = 11 : i64} {
  func.func @_fused_linear_kernel(%arg0: i32, %arg1: i32, %arg2: i32, %arg3: memref<16x32xf32, #tpu.memory_space<vmem>>, %arg4: memref<32x32xf32, #tpu.memory_space<vmem>>, %arg5: memref<1x32xf32, #tpu.memory_space<vmem>>, %arg6: memref<16x32xf32, #tpu.memory_space<vmem>>, %arg7: memref<16x32xf32, #tpu.memory_space<vmem>>) attributes {dimension_semantics = [#tpu.dimension_semantics<parallel>, #tpu.dimension_semantics<parallel>, #tpu.dimension_semantics<arbitrary>], iteration_bounds = array<i64: 1, 1, 1>, scalar_prefetch = 0 : i64, scratch_operands = 1 : i64, tpu.core_type = #tpu.core_type<tc>, window_params = [{transform_indices = @transform_0, window_bounds = array<i64: 16, 32>}, {transform_indices = @transform_1, window_bounds = array<i64: 32, 32>}, {transform_indices = @transform_2, window_bounds = array<i64: 1, 32>}, {transform_indices = @transform_3, window_bounds = array<i64: 16, 32>}]} {
    %c0_i32 = arith.constant 0 : i32
    %0 = arith.cmpi eq, %arg2, %c0_i32 : i32
    %1 = arith.extui %0 : i1 to i32
    %c0_i32_0 = arith.constant 0 : i32
    %2 = arith.cmpi ne, %1, %c0_i32_0 : i32
    scf.if %2 {
      %cst_10 = arith.constant 0.000000e+00 : f32
      %12 = vector.broadcast %cst_10 : f32 to vector<16x32xf32>
      %c0_11 = arith.constant 0 : index
      %c0_12 = arith.constant 0 : index
      %13 = vector.load %arg7[%c0_11, %c0_12] : memref<16x32xf32, #tpu.memory_space<vmem>>, vector<16x32xf32>
      tpu.vector_store %arg7[%c0_11, %c0_12], %12 {strides = array<i32>} : memref<16x32xf32, #tpu.memory_space<vmem>>, vector<16x32xf32>,
    } else {
    }
    %c0 = arith.constant 0 : index
    %c0_1 = arith.constant 0 : index
    %3 = vector.load %arg3[%c0, %c0_1] : memref<16x32xf32, #tpu.memory_space<vmem>>, vector<16x32xf32>
    %c0_2 = arith.constant 0 : index
    %c0_3 = arith.constant 0 : index
    %4 = vector.load %arg4[%c0_2, %c0_3] : memref<32x32xf32, #tpu.memory_space<vmem>>, vector<32x32xf32>
    %c0_4 = arith.constant 0 : index
    %c0_5 = arith.constant 0 : index
    %5 = vector.load %arg7[%c0_4, %c0_5] : memref<16x32xf32, #tpu.memory_space<vmem>>, vector<16x32xf32>
    %cst = arith.constant dense<0.000000e+00> : vector<16x32xf32>
    %6 = tpu.matmul %3, %4, %cst {dimension_numbers = #tpu.dot_dimension_numbers<[1], [0], [0], [1], [0, 0, 1, 1], [], []>} : vector<16x32xf32>, vector<32x32xf32>, vector<16x32xf32> -> vector<16x32xf32>
    %7 = arith.addf %5, %6 : vector<16x32xf32>
    %c0_6 = arith.constant 0 : index
    %c0_7 = arith.constant 0 : index
    %8 = vector.load %arg7[%c0_6, %c0_7] : memref<16x32xf32, #tpu.memory_space<vmem>>, vector<16x32xf32>
    tpu.vector_store %arg7[%c0_6, %c0_7], %7 {strides = array<i32>} : memref<16x32xf32, #tpu.memory_space<vmem>>, vector<16x32xf32>,
    %c0_i32_8 = arith.constant 0 : i32
    %9 = arith.cmpi eq, %arg2, %c0_i32_8 : i32
    %10 = arith.extui %9 : i1 to i32
    %c0_i32_9 = arith.constant 0 : i32
    %11 = arith.cmpi ne, %10, %c0_i32_9 : i32
    scf.if %11 {
      %c0_10 = arith.constant 0 : index
      %c0_11 = arith.constant 0 : index
      %12 = vector.load %arg7[%c0_10, %c0_11] : memref<16x32xf32, #tpu.memory_space<vmem>>, vector<16x32xf32>
      %c0_12 = arith.constant 0 : index
      %c0_13 = arith.constant 0 : index
      %13 = vector.load %arg5[%c0_12, %c0_13] : memref<1x32xf32, #tpu.memory_space<vmem>>, vector<1x32xf32>
      %14 = vector.broadcast %13 : vector<1x32xf32> to vector<16x32xf32>
      %15 = arith.addf %12, %14 : vector<16x32xf32>
      %c0_14 = arith.constant 0 : index
      %c0_15 = arith.constant 0 : index
      %16 = vector.load %arg6[%c0_14, %c0_15] : memref<16x32xf32, #tpu.memory_space<vmem>>, vector<16x32xf32>
      tpu.vector_store %arg6[%c0_14, %c0_15], %15 {strides = array<i32>} : memref<16x32xf32, #tpu.memory_space<vmem>>, vector<16x32xf32>,
    } else {
    }
    return
  }
  func.func @transform_0(%arg0: i32, %arg1: i32, %arg2: i32) -> (i32, i32) {
    %c0_i32 = arith.constant 0 : i32
    return %arg0, %arg2 : i32, i32
  }
  func.func @transform_1(%arg0: i32, %arg1: i32, %arg2: i32) -> (i32, i32) {
    %c0_i32 = arith.constant 0 : i32
    return %arg2, %arg1 : i32, i32
  }
  func.func @transform_2(%arg0: i32, %arg1: i32, %arg2: i32) -> (i32, i32) {
    %c0_i32 = arith.constant 0 : i32
    %c0_i32_0 = arith.constant 0 : i32
    return %c0_i32, %arg1 : i32, i32
  }
  func.func @transform_3(%arg0: i32, %arg1: i32, %arg2: i32) -> (i32, i32) {
    %c0_i32 = arith.constant 0 : i32
    return %arg0, %arg1 : i32, i32
  }
}

module attributes {stable_mosaic.version = 11 : i64} {
  func.func @_fused_linear_kernel(%arg0: i32, %arg1: i32, %arg2: i32, %arg3: memref<16x32xf32, #tpu.memory_space<vmem>>, %arg4: memref<32x96xf32, #tpu.memory_space<vmem>>, %arg5: memref<1x96xf32, #tpu.memory_space<vmem>>, %arg6: memref<16x32xf32, #tpu.memory_space<vmem>>, %arg7: memref<16x32xf32, #tpu.memory_space<vmem>>, %arg8: memref<16x32xf32, #tpu.memory_space<vmem>>, %arg9: memref<16x96xf32, #tpu.memory_space<vmem>>) attributes {dimension_semantics = [#tpu.dimension_semantics<parallel>, #tpu.dimension_semantics<parallel>, #tpu.dimension_semantics<arbitrary>], iteration_bounds = array<i64: 1, 1, 1>, scalar_prefetch = 0 : i64, scratch_operands = 1 : i64, tpu.core_type = #tpu.core_type<tc>, window_params = [{transform_indices = @transform_0, window_bounds = array<i64: 16, 32>}, {transform_indices = @transform_1, window_bounds = array<i64: 32, 96>}, {transform_indices = @transform_2, window_bounds = array<i64: 1, 96>}, {transform_indices = @transform_3, window_bounds = array<i64: 16, 32>}, {transform_indices = @transform_4, window_bounds = array<i64: 16, 32>}, {transform_indices = @transform_5, window_bounds = array<i64: 16, 32>}]} {
    %c0_i32 = arith.constant 0 : i32
    %0 = arith.cmpi eq, %arg2, %c0_i32 : i32
    %1 = arith.extui %0 : i1 to i32
    %c0_i32_0 = arith.constant 0 : i32
    %2 = arith.cmpi ne, %1, %c0_i32_0 : i32
    scf.if %2 {
      %cst_10 = arith.constant 0.000000e+00 : f32
      %12 = vector.broadcast %cst_10 : f32 to vector<16x96xf32>
      %c0_11 = arith.constant 0 : index
      %c0_12 = arith.constant 0 : index
      %13 = vector.load %arg9[%c0_11, %c0_12] : memref<16x96xf32, #tpu.memory_space<vmem>>, vector<16x96xf32>
      tpu.vector_store %arg9[%c0_11, %c0_12], %12 {strides = array<i32>} : memref<16x96xf32, #tpu.memory_space<vmem>>, vector<16x96xf32>,
    } else {
    }
    %c0 = arith.constant 0 : index
    %c0_1 = arith.constant 0 : index
    %3 = vector.load %arg3[%c0, %c0_1] : memref<16x32xf32, #tpu.memory_space<vmem>>, vector<16x32xf32>
    %c0_2 = arith.constant 0 : index
    %c0_3 = arith.constant 0 : index
    %4 = vector.load %arg4[%c0_2, %c0_3] : memref<32x96xf32, #tpu.memory_space<vmem>>, vector<32x96xf32>
    %c0_4 = arith.constant 0 : index
    %c0_5 = arith.constant 0 : index
    %5 = vector.load %arg9[%c0_4, %c0_5] : memref<16x96xf32, #tpu.memory_space<vmem>>, vector<16x96xf32>
    %cst = arith.constant dense<0.000000e+00> : vector<16x96xf32>
    %6 = tpu.matmul %3, %4, %cst {dimension_numbers = #tpu.dot_dimension_numbers<[1], [0], [0], [1], [0, 0, 1, 1], [], []>} : vector<16x32xf32>, vector<32x96xf32>, vector<16x96xf32> -> vector<16x96xf32>
    %7 = arith.addf %5, %6 : vector<16x96xf32>
    %c0_6 = arith.constant 0 : index
    %c0_7 = arith.constant 0 : index
    %8 = vector.load %arg9[%c0_6, %c0_7] : memref<16x96xf32, #tpu.memory_space<vmem>>, vector<16x96xf32>
    tpu.vector_store %arg9[%c0_6, %c0_7], %7 {strides = array<i32>} : memref<16x96xf32, #tpu.memory_space<vmem>>, vector<16x96xf32>,
    %c0_i32_8 = arith.constant 0 : i32
    %9 = arith.cmpi eq, %arg2, %c0_i32_8 : i32
    %10 = arith.extui %9 : i1 to i32
    %c0_i32_9 = arith.constant 0 : i32
    %11 = arith.cmpi ne, %10, %c0_i32_9 : i32
    scf.if %11 {
      %c0_10 = arith.constant 0 : index
      %c0_11 = arith.constant 0 : index
      %12 = vector.load %arg9[%c0_10, %c0_11] : memref<16x96xf32, #tpu.memory_space<vmem>>, vector<16x96xf32>
      %c0_12 = arith.constant 0 : index
      %c0_13 = arith.constant 0 : index
      %13 = vector.load %arg5[%c0_12, %c0_13] : memref<1x96xf32, #tpu.memory_space<vmem>>, vector<1x96xf32>
      %14 = vector.broadcast %13 : vector<1x96xf32> to vector<16x96xf32>
      %15 = arith.addf %12, %14 : vector<16x96xf32>
      %16 = vector.extract_strided_slice %15 {offsets = [0, 0], sizes = [16, 32], strides = [1, 1]} : vector<16x96xf32> to vector<16x32xf32>
      %c0_14 = arith.constant 0 : index
      %c0_15 = arith.constant 0 : index
      %17 = vector.load %arg6[%c0_14, %c0_15] : memref<16x32xf32, #tpu.memory_space<vmem>>, vector<16x32xf32>
      tpu.vector_store %arg6[%c0_14, %c0_15], %16 {strides = array<i32>} : memref<16x32xf32, #tpu.memory_space<vmem>>, vector<16x32xf32>,
      %18 = vector.extract_strided_slice %15 {offsets = [0, 32], sizes = [16, 32], strides = [1, 1]} : vector<16x96xf32> to vector<16x32xf32>
      %c0_16 = arith.constant 0 : index
      %c0_17 = arith.constant 0 : index
      %19 = vector.load %arg7[%c0_16, %c0_17] : memref<16x32xf32, #tpu.memory_space<vmem>>, vector<16x32xf32>
      tpu.vector_store %arg7[%c0_16, %c0_17], %18 {strides = array<i32>} : memref<16x32xf32, #tpu.memory_space<vmem>>, vector<16x32xf32>,
      %20 = vector.extract_strided_slice %15 {offsets = [0, 64], sizes = [16, 32], strides = [1, 1]} : vector<16x96xf32> to vector<16x32xf32>
      %c0_18 = arith.constant 0 : index
      %c0_19 = arith.constant 0 : index
      %21 = vector.load %arg8[%c0_18, %c0_19] : memref<16x32xf32, #tpu.memory_space<vmem>>, vector<16x32xf32>
      tpu.vector_store %arg8[%c0_18, %c0_19], %20 {strides = array<i32>} : memref<16x32xf32, #tpu.memory_space<vmem>>, vector<16x32xf32>,
    } else {
    }
    return
  }
  func.func @transform_0(%arg0: i32, %arg1: i32, %arg2: i32) -> (i32, i32) {
    %c0_i32 = arith.constant 0 : i32
    return %arg0, %arg2 : i32, i32
  }
  func.func @transform_1(%arg0: i32, %arg1: i32, %arg2: i32) -> (i32, i32) {
    %c0_i32 = arith.constant 0 : i32
    return %arg2, %arg1 : i32, i32
  }
  func.func @transform_2(%arg0: i32, %arg1: i32, %arg2: i32) -> (i32, i32) {
    %c0_i32 = arith.constant 0 : i32
    %c0_i32_0 = arith.constant 0 : i32
    return %c0_i32, %arg1 : i32, i32
  }
  func.func @transform_3(%arg0: i32, %arg1: i32, %arg2: i32) -> (i32, i32) {
    %c0_i32 = arith.constant 0 : i32
    %c0_i32_0 = arith.constant 0 : i32
    return %arg0, %c0_i32 : i32, i32
  }
  func.func @transform_4(%arg0: i32, %arg1: i32, %arg2: i32) -> (i32, i32) {
    %c0_i32 = arith.constant 0 : i32
    %c0_i32_0 = arith.constant 0 : i32
    return %arg0, %c0_i32 : i32, i32
  }
  func.func @transform_5(%arg0: i32, %arg1: i32, %arg2: i32) -> (i32, i32) {
    %c0_i32 = arith.constant 0 : i32
    %c0_i32_0 = arith.constant 0 : i32
    return %arg0, %c0_i32 : i32, i32
  }
}

module attributes {stable_mosaic.version = 11 : i64} {
  func.func @_attention_block_kernel(%arg0: i32, %arg1: i32, %arg2: memref<1x8x32xf32, #tpu.memory_space<vmem>>, %arg3: memref<1x8x32xf32, #tpu.memory_space<vmem>>, %arg4: memref<1x8x32xf32, #tpu.memory_space<vmem>>, %arg5: memref<1x1x8xf32, #tpu.memory_space<vmem>>, %arg6: memref<32x32xf32, #tpu.memory_space<vmem>>, %arg7: memref<1x32xf32, #tpu.memory_space<vmem>>, %arg8: memref<1x8x32xf32, #tpu.memory_space<vmem>>, %arg9: memref<1x32xf32, #tpu.memory_space<vmem>>, %arg10: memref<1x32xf32, #tpu.memory_space<vmem>>, %arg11: memref<1x8x32xf32, #tpu.memory_space<vmem>>, %arg12: memref<8x32xf32, #tpu.memory_space<vmem>>) attributes {dimension_semantics = [#tpu.dimension_semantics<parallel>, #tpu.dimension_semantics<parallel>], iteration_bounds = array<i64: 2, 1>, scalar_prefetch = 0 : i64, scratch_operands = 1 : i64, tpu.core_type = #tpu.core_type<tc>, window_params = [{transform_indices = @transform_0, window_bounds = array<i64: 1, 8, 32>}, {transform_indices = @transform_1, window_bounds = array<i64: 1, 8, 32>}, {transform_indices = @transform_2, window_bounds = array<i64: 1, 8, 32>}, {transform_indices = @transform_3, window_bounds = array<i64: 1, 1, 8>}, {pipeline_mode = #tpu.pipeline_mode<synchronous>, transform_indices = @transform_4, window_bounds = array<i64: 32, 32>}, {pipeline_mode = #tpu.pipeline_mode<synchronous>, transform_indices = @transform_5, window_bounds = array<i64: 1, 32>}, {transform_indices = @transform_6, window_bounds = array<i64: 1, 8, 32>}, {pipeline_mode = #tpu.pipeline_mode<synchronous>, transform_indices = @transform_7, window_bounds = array<i64: 1, 32>}, {pipeline_mode = #tpu.pipeline_mode<synchronous>, transform_indices = @transform_8, window_bounds = array<i64: 1, 32>}, {transform_indices = @transform_9, window_bounds = array<i64: 1, 8, 32>}]} {
    %c0 = arith.constant 0 : index
    %c0_0 = arith.constant 0 : index
    %c0_1 = arith.constant 0 : index
    %0 = vector.load %arg2[%c0, %c0_0, %c0_1] : memref<1x8x32xf32, #tpu.memory_space<vmem>>, vector<1x8x32xf32>
    %1 = vector.shape_cast %0 : vector<1x8x32xf32> to vector<8x32xf32>
    %cst = arith.constant 0.353553385 : f32
    %2 = vector.broadcast %cst : f32 to vector<8x32xf32>
    %3 = arith.mulf %1, %2 : vector<8x32xf32>
    %c0_2 = arith.constant 0 : index
    %c0_3 = arith.constant 0 : index
    %c0_4 = arith.constant 0 : index
    %4 = vector.load %arg3[%c0_2, %c0_3, %c0_4] : memref<1x8x32xf32, #tpu.memory_space<vmem>>, vector<1x8x32xf32>
    %5 = vector.shape_cast %4 : vector<1x8x32xf32> to vector<8x32xf32>
    %c0_5 = arith.constant 0 : index
    %c0_6 = arith.constant 0 : index
    %c0_7 = arith.constant 0 : index
    %6 = vector.load %arg4[%c0_5, %c0_6, %c0_7] : memref<1x8x32xf32, #tpu.memory_space<vmem>>, vector<1x8x32xf32>
    %7 = vector.shape_cast %6 : vector<1x8x32xf32> to vector<8x32xf32>
    %c0_8 = arith.constant 0 : index
    %c0_9 = arith.constant 0 : index
    %c0_10 = arith.constant 0 : index
    %8 = vector.load %arg5[%c0_8, %c0_9, %c0_10] : memref<1x1x8xf32, #tpu.memory_space<vmem>>, vector<1x1x8xf32>
    %9 = vector.shape_cast %8 : vector<1x1x8xf32> to vector<1x8xf32>
    %10 = vector.shape_cast %9 : vector<1x8xf32> to vector<1x8xf32>
    %11 = vector.broadcast %10 : vector<1x8xf32> to vector<8x8xf32>
    %12 = vector.extract_strided_slice %3 {offsets = [0, 0], sizes = [8, 8], strides = [1, 1]} : vector<8x32xf32> to vector<8x8xf32>
    %13 = vector.extract_strided_slice %5 {offsets = [0, 0], sizes = [8, 8], strides = [1, 1]} : vector<8x32xf32> to vector<8x8xf32>
    %14 = vector.extract_strided_slice %7 {offsets = [0, 0], sizes = [8, 8], strides = [1, 1]} : vector<8x32xf32> to vector<8x8xf32>
    %cst_11 = arith.constant dense<0.000000e+00> : vector<8x8xf32>
    %15 = tpu.matmul %12, %13, %cst_11 {dimension_numbers = #tpu.dot_dimension_numbers<[1], [1], [0], [0], [0, 0, 1, 0], [], []>} : vector<8x8xf32>, vector<8x8xf32>, vector<8x8xf32> -> vector<8x8xf32>
    %16 = arith.addf %15, %11 : vector<8x8xf32>
    %cst_12 = arith.constant dense<0xFF800000> : vector<8xf32>
    %17 = vector.multi_reduction <maximumf>, %16, %cst_12 [1] : vector<8x8xf32> to vector<8xf32>
    %18 = vector.shape_cast %17 : vector<8xf32> to vector<8x1xf32>
    %19 = vector.broadcast %18 : vector<8x1xf32> to vector<8x8xf32>
    %20 = arith.subf %16, %19 : vector<8x8xf32>
    %21 = math.exp %20 : vector<8x8xf32>
    %cst_13 = arith.constant dense<0.000000e+00> : vector<8xf32>
    %22 = vector.multi_reduction <add>, %21, %cst_13 [1] : vector<8x8xf32> to vector<8xf32>
    %23 = vector.shape_cast %22 : vector<8xf32> to vector<8x1xf32>
    %cst_14 = arith.constant dense<0.000000e+00> : vector<8x8xf32>
    %24 = tpu.matmul %21, %14, %cst_14 {dimension_numbers = #tpu.dot_dimension_numbers<[1], [0], [0], [1], [0, 0, 1, 1], [], []>} : vector<8x8xf32>, vector<8x8xf32>, vector<8x8xf32> -> vector<8x8xf32>
    %25 = tpu.reciprocal %23 {approx = true} : vector<8x1xf32> -> vector<8x1xf32>
    %26 = vector.broadcast %25 : vector<8x1xf32> to vector<8x8xf32>
    %27 = arith.mulf %24, %26 : vector<8x8xf32>
    %c0_15 = arith.constant 0 : index
    %c0_16 = arith.constant 0 : index
    %28 = vector.load %arg12[%c0_15, %c0_16] : memref<8x32xf32, #tpu.memory_space<vmem>>, vector<8x8xf32>
    tpu.vector_store %arg12[%c0_15, %c0_16], %27 {strides = array<i32>} : memref<8x32xf32, #tpu.memory_space<vmem>>, vector<8x8xf32>,
    %29 = vector.extract_strided_slice %3 {offsets = [0, 8], sizes = [8, 8], strides = [1, 1]} : vector<8x32xf32> to vector<8x8xf32>
    %30 = vector.extract_strided_slice %5 {offsets = [0, 8], sizes = [8, 8], strides = [1, 1]} : vector<8x32xf32> to vector<8x8xf32>
    %31 = vector.extract_strided_slice %7 {offsets = [0, 8], sizes = [8, 8], strides = [1, 1]} : vector<8x32xf32> to vector<8x8xf32>
    %cst_17 = arith.constant dense<0.000000e+00> : vector<8x8xf32>
    %32 = tpu.matmul %29, %30, %cst_17 {dimension_numbers = #tpu.dot_dimension_numbers<[1], [1], [0], [0], [0, 0, 1, 0], [], []>} : vector<8x8xf32>, vector<8x8xf32>, vector<8x8xf32> -> vector<8x8xf32>
    %33 = arith.addf %32, %11 : vector<8x8xf32>
    %cst_18 = arith.constant dense<0xFF800000> : vector<8xf32>
    %34 = vector.multi_reduction <maximumf>, %33, %cst_18 [1] : vector<8x8xf32> to vector<8xf32>
    %35 = vector.shape_cast %34 : vector<8xf32> to vector<8x1xf32>
    %36 = vector.broadcast %35 : vector<8x1xf32> to vector<8x8xf32>
    %37 = arith.subf %33, %36 : vector<8x8xf32>
    %38 = math.exp %37 : vector<8x8xf32>
    %cst_19 = arith.constant dense<0.000000e+00> : vector<8xf32>
    %39 = vector.multi_reduction <add>, %38, %cst_19 [1] : vector<8x8xf32> to vector<8xf32>
    %40 = vector.shape_cast %39 : vector<8xf32> to vector<8x1xf32>
    %cst_20 = arith.constant dense<0.000000e+00> : vector<8x8xf32>
    %41 = tpu.matmul %38, %31, %cst_20 {dimension_numbers = #tpu.dot_dimension_numbers<[1], [0], [0], [1], [0, 0, 1, 1], [], []>} : vector<8x8xf32>, vector<8x8xf32>, vector<8x8xf32> -> vector<8x8xf32>
    %42 = tpu.reciprocal %40 {approx = true} : vector<8x1xf32> -> vector<8x1xf32>
    %43 = vector.broadcast %42 : vector<8x1xf32> to vector<8x8xf32>
    %44 = arith.mulf %41, %43 : vector<8x8xf32>
    %c0_21 = arith.constant 0 : index
    %c8 = arith.constant 8 : index
    %45 = vector.load %arg12[%c0_21, %c8] : memref<8x32xf32, #tpu.memory_space<vmem>>, vector<8x8xf32>
    tpu.vector_store %arg12[%c0_21, %c8], %44 {strides = array<i32>} : memref<8x32xf32, #tpu.memory_space<vmem>>, vector<8x8xf32>,
    %46 = vector.extract_strided_slice %3 {offsets = [0, 16], sizes = [8, 8], strides = [1, 1]} : vector<8x32xf32> to vector<8x8xf32>
    %47 = vector.extract_strided_slice %5 {offsets = [0, 16], sizes = [8, 8], strides = [1, 1]} : vector<8x32xf32> to vector<8x8xf32>
    %48 = vector.extract_strided_slice %7 {offsets = [0, 16], sizes = [8, 8], strides = [1, 1]} : vector<8x32xf32> to vector<8x8xf32>
    %cst_22 = arith.constant dense<0.000000e+00> : vector<8x8xf32>
    %49 = tpu.matmul %46, %47, %cst_22 {dimension_numbers = #tpu.dot_dimension_numbers<[1], [1], [0], [0], [0, 0, 1, 0], [], []>} : vector<8x8xf32>, vector<8x8xf32>, vector<8x8xf32> -> vector<8x8xf32>
    %50 = arith.addf %49, %11 : vector<8x8xf32>
    %cst_23 = arith.constant dense<0xFF800000> : vector<8xf32>
    %51 = vector.multi_reduction <maximumf>, %50, %cst_23 [1] : vector<8x8xf32> to vector<8xf32>
    %52 = vector.shape_cast %51 : vector<8xf32> to vector<8x1xf32>
    %53 = vector.broadcast %52 : vector<8x1xf32> to vector<8x8xf32>
    %54 = arith.subf %50, %53 : vector<8x8xf32>
    %55 = math.exp %54 : vector<8x8xf32>
    %cst_24 = arith.constant dense<0.000000e+00> : vector<8xf32>
    %56 = vector.multi_reduction <add>, %55, %cst_24 [1] : vector<8x8xf32> to vector<8xf32>
    %57 = vector.shape_cast %56 : vector<8xf32> to vector<8x1xf32>
    %cst_25 = arith.constant dense<0.000000e+00> : vector<8x8xf32>
    %58 = tpu.matmul %55, %48, %cst_25 {dimension_numbers = #tpu.dot_dimension_numbers<[1], [0], [0], [1], [0, 0, 1, 1], [], []>} : vector<8x8xf32>, vector<8x8xf32>, vector<8x8xf32> -> vector<8x8xf32>
    %59 = tpu.reciprocal %57 {approx = true} : vector<8x1xf32> -> vector<8x1xf32>
    %60 = vector.broadcast %59 : vector<8x1xf32> to vector<8x8xf32>
    %61 = arith.mulf %58, %60 : vector<8x8xf32>
    %c0_26 = arith.constant 0 : index
    %c16 = arith.constant 16 : index
    %62 = vector.load %arg12[%c0_26, %c16] : memref<8x32xf32, #tpu.memory_space<vmem>>, vector<8x8xf32>
    tpu.vector_store %arg12[%c0_26, %c16], %61 {strides = array<i32>} : memref<8x32xf32, #tpu.memory_space<vmem>>, vector<8x8xf32>,
    %63 = vector.extract_strided_slice %3 {offsets = [0, 24], sizes = [8, 8], strides = [1, 1]} : vector<8x32xf32> to vector<8x8xf32>
    %64 = vector.extract_strided_slice %5 {offsets = [0, 24], sizes = [8, 8], strides = [1, 1]} : vector<8x32xf32> to vector<8x8xf32>
    %65 = vector.extract_strided_slice %7 {offsets = [0, 24], sizes = [8, 8], strides = [1, 1]} : vector<8x32xf32> to vector<8x8xf32>
    %cst_27 = arith.constant dense<0.000000e+00> : vector<8x8xf32>
    %66 = tpu.matmul %63, %64, %cst_27 {dimension_numbers = #tpu.dot_dimension_numbers<[1], [1], [0], [0], [0, 0, 1, 0], [], []>} : vector<8x8xf32>, vector<8x8xf32>, vector<8x8xf32> -> vector<8x8xf32>
    %67 = arith.addf %66, %11 : vector<8x8xf32>
    %cst_28 = arith.constant dense<0xFF800000> : vector<8xf32>
    %68 = vector.multi_reduction <maximumf>, %67, %cst_28 [1] : vector<8x8xf32> to vector<8xf32>
    %69 = vector.shape_cast %68 : vector<8xf32> to vector<8x1xf32>
    %70 = vector.broadcast %69 : vector<8x1xf32> to vector<8x8xf32>
    %71 = arith.subf %67, %70 : vector<8x8xf32>
    %72 = math.exp %71 : vector<8x8xf32>
    %cst_29 = arith.constant dense<0.000000e+00> : vector<8xf32>
    %73 = vector.multi_reduction <add>, %72, %cst_29 [1] : vector<8x8xf32> to vector<8xf32>
    %74 = vector.shape_cast %73 : vector<8xf32> to vector<8x1xf32>
    %cst_30 = arith.constant dense<0.000000e+00> : vector<8x8xf32>
    %75 = tpu.matmul %72, %65, %cst_30 {dimension_numbers = #tpu.dot_dimension_numbers<[1], [0], [0], [1], [0, 0, 1, 1], [], []>} : vector<8x8xf32>, vector<8x8xf32>, vector<8x8xf32> -> vector<8x8xf32>
    %76 = tpu.reciprocal %74 {approx = true} : vector<8x1xf32> -> vector<8x1xf32>
    %77 = vector.broadcast %76 : vector<8x1xf32> to vector<8x8xf32>
    %78 = arith.mulf %75, %77 : vector<8x8xf32>
    %c0_31 = arith.constant 0 : index
    %c24 = arith.constant 24 : index
    %79 = vector.load %arg12[%c0_31, %c24] : memref<8x32xf32, #tpu.memory_space<vmem>>, vector<8x8xf32>
    tpu.vector_store %arg12[%c0_31, %c24], %78 {strides = array<i32>} : memref<8x32xf32, #tpu.memory_space<vmem>>, vector<8x8xf32>,
    %c0_32 = arith.constant 0 : index
    %c0_33 = arith.constant 0 : index
    %80 = vector.load %arg12[%c0_32, %c0_33] : memref<8x32xf32, #tpu.memory_space<vmem>>, vector<8x32xf32>
    %c0_34 = arith.constant 0 : index
    %c0_35 = arith.constant 0 : index
    %81 = vector.load %arg6[%c0_34, %c0_35] : memref<32x32xf32, #tpu.memory_space<vmem>>, vector<32x32xf32>
    %cst_36 = arith.constant dense<0.000000e+00> : vector<8x32xf32>
    %82 = tpu.matmul %80, %81, %cst_36 {dimension_numbers = #tpu.dot_dimension_numbers<[1], [0], [0], [1], [0, 0, 1, 1], [], []>} : vector<8x32xf32>, vector<32x32xf32>, vector<8x32xf32> -> vector<8x32xf32>
    %c0_37 = arith.constant 0 : index
    %c0_38 = arith.constant 0 : index
    %83 = vector.load %arg7[%c0_37, %c0_38] : memref<1x32xf32, #tpu.memory_space<vmem>>, vector<1x32xf32>
    %84 = vector.broadcast %83 : vector<1x32xf32> to vector<8x32xf32>
    %85 = arith.addf %82, %84 : vector<8x32xf32>
    %c0_39 = arith.constant 0 : index
    %c0_40 = arith.constant 0 : index
    %c0_41 = arith.constant 0 : index
    %86 = vector.load %arg8[%c0_39, %c0_40, %c0_41] : memref<1x8x32xf32, #tpu.memory_space<vmem>>, vector<1x8x32xf32>
    %87 = vector.shape_cast %86 : vector<1x8x32xf32> to vector<8x32xf32>
    %88 = arith.addf %85, %87 : vector<8x32xf32>
    %cst_42 = arith.constant dense<0.000000e+00> : vector<8xf32>
    %89 = vector.multi_reduction <add>, %88, %cst_42 [1] : vector<8x32xf32> to vector<8xf32>
    %90 = vector.shape_cast %89 : vector<8xf32> to vector<8x1xf32>
    %cst_43 = arith.constant 3.200000e+01 : f32
    %91 = vector.broadcast %cst_43 : f32 to vector<8x1xf32>
    %92 = arith.divf %90, %91 : vector<8x1xf32>
    %93 = vector.broadcast %92 : vector<8x1xf32> to vector<8x32xf32>
    %94 = arith.subf %88, %93 : vector<8x32xf32>
    %95 = arith.mulf %94, %94 : vector<8x32xf32>
    %cst_44 = arith.constant dense<0.000000e+00> : vector<8xf32>
    %96 = vector.multi_reduction <add>, %95, %cst_44 [1] : vector<8x32xf32> to vector<8xf32>
    %97 = vector.shape_cast %96 : vector<8xf32> to vector<8x1xf32>
    %cst_45 = arith.constant 3.200000e+01 : f32
    %98 = vector.broadcast %cst_45 : f32 to vector<8x1xf32>
    %99 = arith.divf %97, %98 : vector<8x1xf32>
    %cst_46 = arith.constant 9.99999996E-13 : f32
    %100 = vector.broadcast %cst_46 : f32 to vector<8x1xf32>
    %101 = arith.addf %99, %100 : vector<8x1xf32>
    %102 = math.rsqrt %101 : vector<8x1xf32>
    %103 = vector.broadcast %102 : vector<8x1xf32> to vector<8x32xf32>
    %104 = arith.mulf %94, %103 : vector<8x32xf32>
    %c0_47 = arith.constant 0 : index
    %c0_48 = arith.constant 0 : index
    %105 = vector.load %arg9[%c0_47, %c0_48] : memref<1x32xf32, #tpu.memory_space<vmem>>, vector<1x32xf32>
    %106 = vector.broadcast %105 : vector<1x32xf32> to vector<8x32xf32>
    %107 = arith.mulf %104, %106 : vector<8x32xf32>
    %c0_49 = arith.constant 0 : index
    %c0_50 = arith.constant 0 : index
    %108 = vector.load %arg10[%c0_49, %c0_50] : memref<1x32xf32, #tpu.memory_space<vmem>>, vector<1x32xf32>
    %109 = vector.broadcast %108 : vector<1x32xf32> to vector<8x32xf32>
    %110 = arith.addf %107, %109 : vector<8x32xf32>
    %c0_51 = arith.constant 0 : index
    %c0_52 = arith.constant 0 : index
    %c0_53 = arith.constant 0 : index
    %111 = vector.load %arg11[%c0_51, %c0_52, %c0_53] : memref<1x8x32xf32, #tpu.memory_space<vmem>>, vector<1x8x32xf32>
    %112 = vector.shape_cast %111 : vector<1x8x32xf32> to vector<8x32xf32>
    %113 = vector.shape_cast %110 : vector<8x32xf32> to vector<1x8x32xf32>
    tpu.vector_store %arg11[%c0_51, %c0_52, %c0_53], %113 {strides = array<i32>} : memref<1x8x32xf32, #tpu.memory_space<vmem>>, vector<1x8x32xf32>,
    return
  }
  func.func @transform_0(%arg0: i32, %arg1: i32) -> (i32, i32, i32) {
    %c0_i32 = arith.constant 0 : i32
    %c0_i32_0 = arith.constant 0 : i32
    return %arg0, %arg1, %c0_i32 : i32, i32, i32
  }
  func.func @transform_1(%arg0: i32, %arg1: i32) -> (i32, i32, i32) {
    %c0_i32 = arith.constant 0 : i32
    %c0_i32_0 = arith.constant 0 : i32
    %c0_i32_1 = arith.constant 0 : i32
    return %arg0, %c0_i32, %c0_i32_0 : i32, i32, i32
  }
  func.func @transform_2(%arg0: i32, %arg1: i32) -> (i32, i32, i32) {
    %c0_i32 = arith.constant 0 : i32
    %c0_i32_0 = arith.constant 0 : i32
    %c0_i32_1 = arith.constant 0 : i32
    return %arg0, %c0_i32, %c0_i32_0 : i32, i32, i32
  }
  func.func @transform_3(%arg0: i32, %arg1: i32) -> (i32, i32, i32) {
    %c0_i32 = arith.constant 0 : i32
    %c0_i32_0 = arith.constant 0 : i32
    %c0_i32_1 = arith.constant 0 : i32
    return %arg0, %c0_i32, %c0_i32_0 : i32, i32, i32
  }
  func.func @transform_4(%arg0: i32, %arg1: i32) -> (i32, i32) {
    %c0_i32 = arith.constant 0 : i32
    %c0_i32_0 = arith.constant 0 : i32
    %c0_i32_1 = arith.constant 0 : i32
    return %c0_i32, %c0_i32_0 : i32, i32
  }
  func.func @transform_5(%arg0: i32, %arg1: i32) -> (i32, i32) {
    %c0_i32 = arith.constant 0 : i32
    %c0_i32_0 = arith.constant 0 : i32
    %c0_i32_1 = arith.constant 0 : i32
    return %c0_i32, %c0_i32_0 : i32, i32
  }
  func.func @transform_6(%arg0: i32, %arg1: i32) -> (i32, i32, i32) {
    %c0_i32 = arith.constant 0 : i32
    %c0_i32_0 = arith.constant 0 : i32
    return %arg0, %arg1, %c0_i32 : i32, i32, i32
  }
  func.func @transform_7(%arg0: i32, %arg1: i32) -> (i32, i32) {
    %c0_i32 = arith.constant 0 : i32
    %c0_i32_0 = arith.constant 0 : i32
    %c0_i32_1 = arith.constant 0 : i32
    return %c0_i32, %c0_i32_0 : i32, i32
  }
  func.func @transform_8(%arg0: i32, %arg1: i32) -> (i32, i32) {
    %c0_i32 = arith.constant 0 : i32
    %c0_i32_0 = arith.constant 0 : i32
    %c0_i32_1 = arith.constant 0 : i32
    return %c0_i32, %c0_i32_0 : i32, i32
  }
  func.func @transform_9(%arg0: i32, %arg1: i32) -> (i32, i32, i32) {
    %c0_i32 = arith.constant 0 : i32
    %c0_i32_0 = arith.constant 0 : i32
    return %arg0, %arg1, %c0_i32 : i32, i32, i32
  }
}

module attributes {stable_mosaic.version = 11 : i64} {
  func.func @_fused_linear_kernel(%arg0: i32, %arg1: i32, %arg2: i32, %arg3: memref<16x32xf32, #tpu.memory_space<vmem>>, %arg4: memref<32x64xf32, #tpu.memory_space<vmem>>, %arg5: memref<1x64xf32, #tpu.memory_space<vmem>>, %arg6: memref<16x32xf32, #tpu.memory_space<vmem>>, %arg7: memref<16x32xf32, #tpu.memory_space<vmem>>, %arg8: memref<16x64xf32, #tpu.memory_space<vmem>>) attributes {dimension_semantics = [#tpu.dimension_semantics<parallel>, #tpu.dimension_semantics<parallel>, #tpu.dimension_semantics<arbitrary>], iteration_bounds = array<i64: 1, 1, 1>, scalar_prefetch = 0 : i64, scratch_operands = 1 : i64, tpu.core_type = #tpu.core_type<tc>, window_params = [{transform_indices = @transform_0, window_bounds = array<i64: 16, 32>}, {transform_indices = @transform_1, window_bounds = array<i64: 32, 64>}, {transform_indices = @transform_2, window_bounds = array<i64: 1, 64>}, {transform_indices = @transform_3, window_bounds = array<i64: 16, 32>}, {transform_indices = @transform_4, window_bounds = array<i64: 16, 32>}]} {
    %c0_i32 = arith.constant 0 : i32
    %0 = arith.cmpi eq, %arg2, %c0_i32 : i32
    %1 = arith.extui %0 : i1 to i32
    %c0_i32_0 = arith.constant 0 : i32
    %2 = arith.cmpi ne, %1, %c0_i32_0 : i32
    scf.if %2 {
      %cst_10 = arith.constant 0.000000e+00 : f32
      %12 = vector.broadcast %cst_10 : f32 to vector<16x64xf32>
      %c0_11 = arith.constant 0 : index
      %c0_12 = arith.constant 0 : index
      %13 = vector.load %arg8[%c0_11, %c0_12] : memref<16x64xf32, #tpu.memory_space<vmem>>, vector<16x64xf32>
      tpu.vector_store %arg8[%c0_11, %c0_12], %12 {strides = array<i32>} : memref<16x64xf32, #tpu.memory_space<vmem>>, vector<16x64xf32>,
    } else {
    }
    %c0 = arith.constant 0 : index
    %c0_1 = arith.constant 0 : index
    %3 = vector.load %arg3[%c0, %c0_1] : memref<16x32xf32, #tpu.memory_space<vmem>>, vector<16x32xf32>
    %c0_2 = arith.constant 0 : index
    %c0_3 = arith.constant 0 : index
    %4 = vector.load %arg4[%c0_2, %c0_3] : memref<32x64xf32, #tpu.memory_space<vmem>>, vector<32x64xf32>
    %c0_4 = arith.constant 0 : index
    %c0_5 = arith.constant 0 : index
    %5 = vector.load %arg8[%c0_4, %c0_5] : memref<16x64xf32, #tpu.memory_space<vmem>>, vector<16x64xf32>
    %cst = arith.constant dense<0.000000e+00> : vector<16x64xf32>
    %6 = tpu.matmul %3, %4, %cst {dimension_numbers = #tpu.dot_dimension_numbers<[1], [0], [0], [1], [0, 0, 1, 1], [], []>} : vector<16x32xf32>, vector<32x64xf32>, vector<16x64xf32> -> vector<16x64xf32>
    %7 = arith.addf %5, %6 : vector<16x64xf32>
    %c0_6 = arith.constant 0 : index
    %c0_7 = arith.constant 0 : index
    %8 = vector.load %arg8[%c0_6, %c0_7] : memref<16x64xf32, #tpu.memory_space<vmem>>, vector<16x64xf32>
    tpu.vector_store %arg8[%c0_6, %c0_7], %7 {strides = array<i32>} : memref<16x64xf32, #tpu.memory_space<vmem>>, vector<16x64xf32>,
    %c0_i32_8 = arith.constant 0 : i32
    %9 = arith.cmpi eq, %arg2, %c0_i32_8 : i32
    %10 = arith.extui %9 : i1 to i32
    %c0_i32_9 = arith.constant 0 : i32
    %11 = arith.cmpi ne, %10, %c0_i32_9 : i32
    scf.if %11 {
      %c0_10 = arith.constant 0 : index
      %c0_11 = arith.constant 0 : index
      %12 = vector.load %arg8[%c0_10, %c0_11] : memref<16x64xf32, #tpu.memory_space<vmem>>, vector<16x64xf32>
      %c0_12 = arith.constant 0 : index
      %c0_13 = arith.constant 0 : index
      %13 = vector.load %arg5[%c0_12, %c0_13] : memref<1x64xf32, #tpu.memory_space<vmem>>, vector<1x64xf32>
      %14 = vector.broadcast %13 : vector<1x64xf32> to vector<16x64xf32>
      %15 = arith.addf %12, %14 : vector<16x64xf32>
      %16 = vector.extract_strided_slice %15 {offsets = [0, 0], sizes = [16, 32], strides = [1, 1]} : vector<16x64xf32> to vector<16x32xf32>
      %c0_14 = arith.constant 0 : index
      %c0_15 = arith.constant 0 : index
      %17 = vector.load %arg6[%c0_14, %c0_15] : memref<16x32xf32, #tpu.memory_space<vmem>>, vector<16x32xf32>
      tpu.vector_store %arg6[%c0_14, %c0_15], %16 {strides = array<i32>} : memref<16x32xf32, #tpu.memory_space<vmem>>, vector<16x32xf32>,
      %18 = vector.extract_strided_slice %15 {offsets = [0, 32], sizes = [16, 32], strides = [1, 1]} : vector<16x64xf32> to vector<16x32xf32>
      %c0_16 = arith.constant 0 : index
      %c0_17 = arith.constant 0 : index
      %19 = vector.load %arg7[%c0_16, %c0_17] : memref<16x32xf32, #tpu.memory_space<vmem>>, vector<16x32xf32>
      tpu.vector_store %arg7[%c0_16, %c0_17], %18 {strides = array<i32>} : memref<16x32xf32, #tpu.memory_space<vmem>>, vector<16x32xf32>,
    } else {
    }
    return
  }
  func.func @transform_0(%arg0: i32, %arg1: i32, %arg2: i32) -> (i32, i32) {
    %c0_i32 = arith.constant 0 : i32
    return %arg0, %arg2 : i32, i32
  }
  func.func @transform_1(%arg0: i32, %arg1: i32, %arg2: i32) -> (i32, i32) {
    %c0_i32 = arith.constant 0 : i32
    return %arg2, %arg1 : i32, i32
  }
  func.func @transform_2(%arg0: i32, %arg1: i32, %arg2: i32) -> (i32, i32) {
    %c0_i32 = arith.constant 0 : i32
    %c0_i32_0 = arith.constant 0 : i32
    return %c0_i32, %arg1 : i32, i32
  }
  func.func @transform_3(%arg0: i32, %arg1: i32, %arg2: i32) -> (i32, i32) {
    %c0_i32 = arith.constant 0 : i32
    %c0_i32_0 = arith.constant 0 : i32
    return %arg0, %c0_i32 : i32, i32
  }
  func.func @transform_4(%arg0: i32, %arg1: i32, %arg2: i32) -> (i32, i32) {
    %c0_i32 = arith.constant 0 : i32
    %c0_i32_0 = arith.constant 0 : i32
    return %arg0, %c0_i32 : i32, i32
  }
}

module attributes {stable_mosaic.version = 11 : i64} {
  func.func @_fused_ffn_kernel(%arg0: i32, %arg1: i32, %arg2: memref<16x32xf32, #tpu.memory_space<vmem>>, %arg3: memref<32x64xf32, #tpu.memory_space<vmem>>, %arg4: memref<1x64xf32, #tpu.memory_space<vmem>>, %arg5: memref<64x32xf32, #tpu.memory_space<vmem>>, %arg6: memref<1x32xf32, #tpu.memory_space<vmem>>, %arg7: memref<1x32xf32, #tpu.memory_space<vmem>>, %arg8: memref<1x32xf32, #tpu.memory_space<vmem>>, %arg9: memref<16x32xf32, #tpu.memory_space<vmem>>, %arg10: memref<16x32xf32, #tpu.memory_space<vmem>>) attributes {dimension_semantics = [#tpu.dimension_semantics<parallel>, #tpu.dimension_semantics<arbitrary>], iteration_bounds = array<i64: 1, 1>, scalar_prefetch = 0 : i64, scratch_operands = 1 : i64, tpu.core_type = #tpu.core_type<tc>, window_params = [{transform_indices = @transform_0, window_bounds = array<i64: 16, 32>}, {transform_indices = @transform_1, window_bounds = array<i64: 32, 64>}, {transform_indices = @transform_2, window_bounds = array<i64: 1, 64>}, {transform_indices = @transform_3, window_bounds = array<i64: 64, 32>}, {pipeline_mode = #tpu.pipeline_mode<synchronous>, transform_indices = @transform_4, window_bounds = array<i64: 1, 32>}, {pipeline_mode = #tpu.pipeline_mode<synchronous>, transform_indices = @transform_5, window_bounds = array<i64: 1, 32>}, {pipeline_mode = #tpu.pipeline_mode<synchronous>, transform_indices = @transform_6, window_bounds = array<i64: 1, 32>}, {transform_indices = @transform_7, window_bounds = array<i64: 16, 32>}]} {
    %c0_i32 = arith.constant 0 : i32
    %0 = arith.cmpi eq, %arg1, %c0_i32 : i32
    %1 = arith.extui %0 : i1 to i32
    %c0_i32_0 = arith.constant 0 : i32
    %2 = arith.cmpi ne, %1, %c0_i32_0 : i32
    scf.if %2 {
      %cst_18 = arith.constant 0.000000e+00 : f32
      %25 = vector.broadcast %cst_18 : f32 to vector<16x32xf32>
      %c0_19 = arith.constant 0 : index
      %c0_20 = arith.constant 0 : index
      %26 = vector.load %arg10[%c0_19, %c0_20] : memref<16x32xf32, #tpu.memory_space<vmem>>, vector<16x32xf32>
      tpu.vector_store %arg10[%c0_19, %c0_20], %25 {strides = array<i32>} : memref<16x32xf32, #tpu.memory_space<vmem>>, vector<16x32xf32>,
    } else {
    }
    %c0 = arith.constant 0 : index
    %c0_1 = arith.constant 0 : index
    %3 = vector.load %arg2[%c0, %c0_1] : memref<16x32xf32, #tpu.memory_space<vmem>>, vector<16x32xf32>
    %c0_2 = arith.constant 0 : index
    %c0_3 = arith.constant 0 : index
    %4 = vector.load %arg3[%c0_2, %c0_3] : memref<32x64xf32, #tpu.memory_space<vmem>>, vector<32x64xf32>
    %c0_4 = arith.constant 0 : index
    %c0_5 = arith.constant 0 : index
    %5 = vector.load %arg5[%c0_4, %c0_5] : memref<64x32xf32, #tpu.memory_space<vmem>>, vector<64x32xf32>
    %cst = arith.constant dense<0.000000e+00> : vector<16x64xf32>
    %6 = tpu.matmul %3, %4, %cst {dimension_numbers = #tpu.dot_dimension_numbers<[1], [0], [0], [1], [0, 0, 1, 1], [], []>} : vector<16x32xf32>, vector<32x64xf32>, vector<16x64xf32> -> vector<16x64xf32>
    %c0_6 = arith.constant 0 : index
    %c0_7 = arith.constant 0 : index
    %7 = vector.load %arg4[%c0_6, %c0_7] : memref<1x64xf32, #tpu.memory_space<vmem>>, vector<1x64xf32>
    %8 = vector.broadcast %7 : vector<1x64xf32> to vector<16x64xf32>
    %9 = arith.addf %6, %8 : vector<16x64xf32>
    %cst_8 = arith.constant 5.000000e-01 : f32
    %10 = vector.broadcast %cst_8 : f32 to vector<16x64xf32>
    %11 = arith.mulf %10, %9 : vector<16x64xf32>
    %cst_9 = arith.constant 0.707106769 : f32
    %12 = vector.broadcast %cst_9 : f32 to vector<16x64xf32>
    %13 = arith.mulf %9, %12 : vector<16x64xf32>
    %14 = math.erf %13 : vector<16x64xf32>
    %cst_10 = arith.constant 1.000000e+00 : f32
    %15 = vector.broadcast %cst_10 : f32 to vector<16x64xf32>
    %16 = arith.addf %15, %14 : vector<16x64xf32>
    %17 = arith.mulf %11, %16 : vector<16x64xf32>
    %c0_11 = arith.constant 0 : index
    %c0_12 = arith.constant 0 : index
    %18 = vector.load %arg10[%c0_11, %c0_12] : memref<16x32xf32, #tpu.memory_space<vmem>>, vector<16x32xf32>
    %cst_13 = arith.constant dense<0.000000e+00> : vector<16x32xf32>
    %19 = tpu.matmul %17, %5, %cst_13 {dimension_numbers = #tpu.dot_dimension_numbers<[1], [0], [0], [1], [0, 0, 1, 1], [], []>} : vector<16x64xf32>, vector<64x32xf32>, vector<16x32xf32> -> vector<16x32xf32>
    %20 = arith.addf %18, %19 : vector<16x32xf32>
    %c0_14 = arith.constant 0 : index
    %c0_15 = arith.constant 0 : index
    %21 = vector.load %arg10[%c0_14, %c0_15] : memref<16x32xf32, #tpu.memory_space<vmem>>, vector<16x32xf32>
    tpu.vector_store %arg10[%c0_14, %c0_15], %20 {strides = array<i32>} : memref<16x32xf32, #tpu.memory_space<vmem>>, vector<16x32xf32>,
    %c0_i32_16 = arith.constant 0 : i32
    %22 = arith.cmpi eq, %arg1, %c0_i32_16 : i32
    %23 = arith.extui %22 : i1 to i32
    %c0_i32_17 = arith.constant 0 : i32
    %24 = arith.cmpi ne, %23, %c0_i32_17 : i32
    scf.if %24 {
      %c0_18 = arith.constant 0 : index
      %c0_19 = arith.constant 0 : index
      %25 = vector.load %arg10[%c0_18, %c0_19] : memref<16x32xf32, #tpu.memory_space<vmem>>, vector<16x32xf32>
      %c0_20 = arith.constant 0 : index
      %c0_21 = arith.constant 0 : index
      %26 = vector.load %arg6[%c0_20, %c0_21] : memref<1x32xf32, #tpu.memory_space<vmem>>, vector<1x32xf32>
      %27 = vector.broadcast %26 : vector<1x32xf32> to vector<16x32xf32>
      %28 = arith.addf %25, %27 : vector<16x32xf32>
      %29 = arith.addf %28, %3 : vector<16x32xf32>
      %cst_22 = arith.constant dense<0.000000e+00> : vector<16xf32>
      %30 = vector.multi_reduction <add>, %29, %cst_22 [1] : vector<16x32xf32> to vector<16xf32>
      %31 = vector.shape_cast %30 : vector<16xf32> to vector<16x1xf32>
      %cst_23 = arith.constant 3.200000e+01 : f32
      %32 = vector.broadcast %cst_23 : f32 to vector<16x1xf32>
      %33 = arith.divf %31, %32 : vector<16x1xf32>
      %34 = vector.broadcast %33 : vector<16x1xf32> to vector<16x32xf32>
      %35 = arith.subf %29, %34 : vector<16x32xf32>
      %36 = arith.mulf %35, %35 : vector<16x32xf32>
      %cst_24 = arith.constant dense<0.000000e+00> : vector<16xf32>
      %37 = vector.multi_reduction <add>, %36, %cst_24 [1] : vector<16x32xf32> to vector<16xf32>
      %38 = vector.shape_cast %37 : vector<16xf32> to vector<16x1xf32>
      %cst_25 = arith.constant 3.200000e+01 : f32
      %39 = vector.broadcast %cst_25 : f32 to vector<16x1xf32>
      %40 = arith.divf %38, %39 : vector<16x1xf32>
      %cst_26 = arith.constant 9.99999996E-13 : f32
      %41 = vector.broadcast %cst_26 : f32 to vector<16x1xf32>
      %42 = arith.addf %40, %41 : vector<16x1xf32>
      %43 = math.rsqrt %42 : vector<16x1xf32>
      %44 = vector.broadcast %43 : vector<16x1xf32> to vector<16x32xf32>
      %45 = arith.mulf %35, %44 : vector<16x32xf32>
      %c0_27 = arith.constant 0 : index
      %c0_28 = arith.constant 0 : index
      %46 = vector.load %arg7[%c0_27, %c0_28] : memref<1x32xf32, #tpu.memory_space<vmem>>, vector<1x32xf32>
      %47 = vector.broadcast %46 : vector<1x32xf32> to vector<16x32xf32>
      %48 = arith.mulf %45, %47 : vector<16x32xf32>
      %c0_29 = arith.constant 0 : index
      %c0_30 = arith.constant 0 : index
      %49 = vector.load %arg8[%c0_29, %c0_30] : memref<1x32xf32, #tpu.memory_space<vmem>>, vector<1x32xf32>
      %50 = vector.broadcast %49 : vector<1x32xf32> to vector<16x32xf32>
      %51 = arith.addf %48, %50 : vector<16x32xf32>
      %c0_31 = arith.constant 0 : index
      %c0_32 = arith.constant 0 : index
      %52 = vector.load %arg9[%c0_31, %c0_32] : memref<16x32xf32, #tpu.memory_space<vmem>>, vector<16x32xf32>
      tpu.vector_store %arg9[%c0_31, %c0_32], %51 {strides = array<i32>} : memref<16x32xf32, #tpu.memory_space<vmem>>, vector<16x32xf32>,
    } else {
    }
    return
  }
  func.func @transform_0(%arg0: i32, %arg1: i32) -> (i32, i32) {
    %c0_i32 = arith.constant 0 : i32
    %c0_i32_0 = arith.constant 0 : i32
    return %arg0, %c0_i32 : i32, i32
  }
  func.func @transform_1(%arg0: i32, %arg1: i32) -> (i32, i32) {
    %c0_i32 = arith.constant 0 : i32
    %c0_i32_0 = arith.constant 0 : i32
    return %c0_i32, %arg1 : i32, i32
  }
  func.func @transform_2(%arg0: i32, %arg1: i32) -> (i32, i32) {
    %c0_i32 = arith.constant 0 : i32
    %c0_i32_0 = arith.constant 0 : i32
    return %c0_i32, %arg1 : i32, i32
  }
  func.func @transform_3(%arg0: i32, %arg1: i32) -> (i32, i32) {
    %c0_i32 = arith.constant 0 : i32
    %c0_i32_0 = arith.constant 0 : i32
    return %arg1, %c0_i32 : i32, i32
  }
  func.func @transform_4(%arg0: i32, %arg1: i32) -> (i32, i32) {
    %c0_i32 = arith.constant 0 : i32
    %c0_i32_0 = arith.constant 0 : i32
    %c0_i32_1 = arith.constant 0 : i32
    return %c0_i32, %c0_i32_0 : i32, i32
  }
  func.func @transform_5(%arg0: i32, %arg1: i32) -> (i32, i32) {
    %c0_i32 = arith.constant 0 : i32
    %c0_i32_0 = arith.constant 0 : i32
    %c0_i32_1 = arith.constant 0 : i32
    return %c0_i32, %c0_i32_0 : i32, i32
  }
  func.func @transform_6(%arg0: i32, %arg1: i32) -> (i32, i32) {
    %c0_i32 = arith.constant 0 : i32
    %c0_i32_0 = arith.constant 0 : i32
    %c0_i32_1 = arith.constant 0 : i32
    return %c0_i32, %c0_i32_0 : i32, i32
  }
  func.func @transform_7(%arg0: i32, %arg1: i32) -> (i32, i32) {
    %c0_i32 = arith.constant 0 : i32
    %c0_i32_0 = arith.constant 0 : i32
    return %arg0, %c0_i32 : i32, i32
  }
}

</mosaic_0001>

<bundles_post_ra>
// kernel: transformer_decoder_layer.8
= control target key start
LH: loop header
LB: loop body
LE: loop exit
PB: predicated region body
PF: predicated region fallthrough
CT: control target
= control target key end

     0   :  { %vm18_vm0 = vcmask 261120   ;;  %v164_v3 = vmov 0.0   ;;  %s220_s1 = inlined_call_operand.vmem [shape: f32[32,32], index: 1, kind: input, shape index: {}]   ;;  %s221_s0 = inlined_call_operand.vmem [shape: f32[16,32], index: 0, kind: input, shape index: {}]   ;;  %s222_s2 = inlined_call_operand.vmem [shape: f32[1,32], index: 2, kind: input, shape index: {}]   ;;  %s223_s3 = inlined_call_operand.vmem [shape: f32[16,32], index: 3, kind: output, shape index: {}]  }
   0x1   :  { %v23_v0 = vld [vmem:[%s220_s1] sm:$0xff]  ;;  %v24_v1 = vld [vmem:[%s220_s1 + $0x8] sm:$0xff]  ;;  %v25_v2 = vld [vmem:[%s220_s1 + $0x10] sm:$0xff]  ;;  %20 = vst.msk [vmem:[#allocation2 + $0x8] sm:$0xff] %vm18_vm0, %v164_v3 }
   0x2   :  { %19 = vst.msk [vmem:[#allocation2] sm:$0xff] %vm18_vm0, %v164_v3  ;;  %v155_v4 = vpack.c.bf16 %v24_v1, %v23_v0  ;;  %v26_v5 = vld [vmem:[%s220_s1 + $0x18] sm:$0xff]  ;;  %v21_v6 = vld [vmem:[%s221_s0] sm:$0xff]  ;;  %v22_v8 = vld [vmem:[%s221_s0 + $0x8] sm:$0xff] }
   0x3   :  { %v159_v7 = vpack.c.bf16 %v26_v5, %v25_v2  ;;  %152 = vmatprep.mubr.msk.f32.mxu0 %vm18_vm0, %v21_v6  ;;  %v137_v15 = vld [vmem:[%s222_s2] ss:$0 sm:$0xff] }
   0x4   :  { %156 = vmatprep.subr.bf16.mxu0 %v155_v4 }
   0x5   :  { %158 = vmatpush3.bf16.msra.mxu0 %v155_v4 }
   0x6   :  { %160 = vmatprep.subr.bf16.mxu0 %v159_v7 }
   0x8   :  { %v28_v9 = vld [vmem:[#allocation2 + $0x8] sm:$0xff] }
   0x9   :  { %162 = vmatpush3.bf16.msra.mxu0 %v159_v7  ;;  %v27_v10 = vld [vmem:[#allocation2] sm:$0xff] }
   0xc   :  { %153 = vmatmul.mubr.msk.f32.vlgmr.msra.gmra.mrb[0].mxu0 %vm18_vm0, %v22_v8 }
  0xdf   :  { %v154_v11 = vpop.f32.mrb[0].mxu0 }
  0xe0   :  { %v112_v12 = vadd.f32 %v154_v11, %v28_v9  ;;  %v102_v13 = vpop.f32.mrb[1].mxu0 }
  0xe1   :  { %v111_v14 = vadd.f32 %v102_v13, %v27_v10 }
  0xe2   :  { %114 = vst.msk [vmem:[#allocation2 + $0x8] sm:$0xff] %vm18_vm0, %v112_v12 }
  0xe3   :  { %113 = vst.msk [vmem:[#allocation2] sm:$0xff] %vm18_vm0, %v111_v14 }
  0xe9   :  { %v119_v16 = vld [vmem:[#allocation2 + $0x8] sm:$0xff] }
  0xea   :  { %v128_v17 = vadd.f32 %v137_v15, %v119_v16  ;;  %v118_v18 = vld [vmem:[#allocation2] sm:$0xff] }
  0xeb   :  { %v127_v19 = vadd.f32 %v137_v15, %v118_v18 }
  0xec   :  { %130 = vst.msk [vmem:[%s223_s3 + $0x8] sm:$0xff] %vm18_vm0, %v128_v17 }
  0xed   :  { %129 = vst.msk [vmem:[%s223_s3] sm:$0xff] %vm18_vm0, %v127_v19 }

// kernel: transformer_decoder_layer.6
= control target key start
LH: loop header
LB: loop body
LE: loop exit
PB: predicated region body
PF: predicated region fallthrough
CT: control target
= control target key end

     0   :  { %vm32_vm0 = vcmask 261120   ;;  %vm21_vm1 = vcmask 785408   ;;  %v196_v3 = vmov 0.0   ;;  %s197_s7 = smov 64   ;;  %s198_s10 = smov 96   ;;  %s280_s1 = inlined_call_operand.vmem [shape: f32[32,96], index: 1, kind: input, shape index: {}]   ;;  %s281_s0 = inlined_call_operand.vmem [shape: f32[16,32], index: 0, kind: input, shape index: {}]   ;;  %s282_s2 = inlined_call_operand.vmem [shape: f32[1,96], index: 2, kind: input, shape index: {}]   ;;  %s283_s3 = inlined_call_operand.vmem [shape: f32[16,32], index: 3, kind: output, shape index: {0}]   ;;  %s284_s5 = inlined_call_operand.vmem [shape: f32[16,32], index: 5, kind: output, shape index: {2}]   ;;  %s285_s4 = inlined_call_operand.vmem [shape: f32[16,32], index: 4, kind: output, shape index: {1}]  }
   0x1   :  { %v26_v0 = vld [vmem:[%s280_s1] sm:$0xff]  ;;  %v27_v1 = vld [vmem:[%s280_s1 + $0x8] sm:$0xff]  ;;  %v28_v2 = vld [vmem:[%s280_s1 + $0x10] sm:$0xff]  ;;  %23 = vst.msk [vmem:[#allocation2 + $0x8] sm:$0xff] %vm21_vm1, %v196_v3 }
   0x2   :  { %22 = vst.msk [vmem:[#allocation2] sm:$0xff] %vm21_vm1, %v196_v3  ;;  %v185_v4 = vpack.c.bf16 %v27_v1, %v26_v0  ;;  %v29_v5 = vld [vmem:[%s280_s1 + $0x18] sm:$0xff]  ;;  %v24_v6 = vld [vmem:[%s281_s0] sm:$0xff]  ;;  %v25_v8 = vld [vmem:[%s281_s0 + $0x8] sm:$0xff] }
   0x3   :  { %v189_v7 = vpack.c.bf16 %v29_v5, %v28_v2  ;;  %182 = vmatprep.mubr.msk.f32.mxu0 %vm32_vm0, %v24_v6  ;;  %v167_v15 = vld [vmem:[%s282_s2] ss:$0 sm:$0xff] }
   0x4   :  { %186 = vmatprep.subr.bf16.mxu0 %v185_v4 }
   0x5   :  { %188 = vmatpush3.bf16.msra.mxu0 %v185_v4 }
   0x6   :  { %190 = vmatprep.subr.bf16.mxu0 %v189_v7 }
   0x8   :  { %v31_v9 = vld [vmem:[#allocation2 + $0x8] sm:$0xff] }
   0x9   :  { %192 = vmatpush3.bf16.msra.mxu0 %v189_v7  ;;  %v30_v10 = vld [vmem:[#allocation2] sm:$0xff] }
   0xc   :  { %183 = vmatmul.mubr.msk.f32.vlgmr.msra.gmra.mrb[0].mxu0 %vm32_vm0, %v25_v8 }
  0xdf   :  { %v184_v11 = vpop.f32.mrb[0].mxu0 }
  0xe0   :  { %v115_v12 = vadd.f32 %v184_v11, %v31_v9  ;;  %v105_v13 = vpop.f32.mrb[1].mxu0 }
  0xe1   :  { %v114_v14 = vadd.f32 %v105_v13, %v30_v10 }
  0xe2   :  { %118 = vst.msk [vmem:[#allocation2 + $0x8] sm:$0xff] %vm21_vm1, %v115_v12 }
  0xe3   :  { %117 = vst.msk [vmem:[#allocation2] sm:$0xff] %vm21_vm1, %v114_v14 }
  0xe9   :  { %v123_v16 = vld [vmem:[#allocation2 + $0x8] sm:$0xff] }
  0xea   :  { %v122_v17 = vld [vmem:[#allocation2] sm:$0xff]  ;;  %v132_v18 = vadd.f32 %v167_v15, %v123_v16 }
  0xeb   :  { %v131_v19 = vadd.f32 %v167_v15, %v122_v17 }
  0xec   :  { %134 = vst.msk [vmem:[%s283_s3 + $0x8] sm:$0xff] %vm32_vm0, %v132_v18 }
  0xed   :  { %145 = vrot.lane.b32.xlu1 %v131_v19, %s197_s7  ;;  %133 = vst.msk [vmem:[%s283_s3] sm:$0xff] %vm32_vm0, %v131_v19  ;;  %137 = vrot.lane.b32.xlu0 %v131_v19, %s198_s10 }
  0xf1   :  { %147 = vrot.lane.b32.xlu1 %v132_v18, %s197_s7  ;;  %139 = vrot.lane.b32.xlu0 %v132_v18, %s198_s10 }
 0x15f   :  { %v146_v20 = vpop.permute.xlu1 %145  ;;  %v138_v21 = vpop.permute.xlu0 %137 }
 0x160   :  { %151 = vst.msk [vmem:[%s284_s5] sm:$0xff] %vm32_vm0, %v146_v20  ;;  %143 = vst.msk [vmem:[%s285_s4] sm:$0xff] %vm32_vm0, %v138_v21 }
 0x163   :  { %v148_v22 = vpop.permute.xlu1 %147  ;;  %v140_v23 = vpop.permute.xlu0 %139 }
 0x164   :  { %152 = vst.msk [vmem:[%s284_s5 + $0x8] sm:$0xff] %vm32_vm0, %v148_v22  ;;  %144 = vst.msk [vmem:[%s285_s4 + $0x8] sm:$0xff] %vm32_vm0, %v140_v23 }

// kernel: transformer_decoder_layer.9
= control target key start
LH: loop header
LB: loop body
LE: loop exit
PB: predicated region body
PF: predicated region fallthrough
CT: control target
= control target key end

     0   :  { %vm31_vm0 = vcmask 261120   ;;  %vm20_vm1 = vcmask 523264   ;;  %v182_v3 = vmov 0.0   ;;  %s183_s29 = smov 96   ;;  %s252_s1 = inlined_call_operand.vmem [shape: f32[32,64], index: 1, kind: input, shape index: {}]   ;;  %s253_s0 = inlined_call_operand.vmem [shape: f32[16,32], index: 0, kind: input, shape index: {}]   ;;  %s254_s2 = inlined_call_operand.vmem [shape: f32[1,64], index: 2, kind: input, shape index: {}]   ;;  %s255_s3 = inlined_call_operand.vmem [shape: f32[16,32], index: 3, kind: output, shape index: {0}]   ;;  %s256_s4 = inlined_call_operand.vmem [shape: f32[16,32], index: 4, kind: output, shape index: {1}]  }
   0x1   :  { %v25_v0 = vld [vmem:[%s252_s1] sm:$0xff]  ;;  %v26_v1 = vld [vmem:[%s252_s1 + $0x8] sm:$0xff]  ;;  %v27_v2 = vld [vmem:[%s252_s1 + $0x10] sm:$0xff]  ;;  %22 = vst.msk [vmem:[#allocation2 + $0x8] sm:$0xff] %vm20_vm1, %v182_v3 }
   0x2   :  { %21 = vst.msk [vmem:[#allocation2] sm:$0xff] %vm20_vm1, %v182_v3  ;;  %v172_v4 = vpack.c.bf16 %v26_v1, %v25_v0  ;;  %v28_v5 = vld [vmem:[%s252_s1 + $0x18] sm:$0xff]  ;;  %v23_v6 = vld [vmem:[%s253_s0] sm:$0xff]  ;;  %v24_v8 = vld [vmem:[%s253_s0 + $0x8] sm:$0xff] }
   0x3   :  { %v176_v7 = vpack.c.bf16 %v28_v5, %v27_v2  ;;  %169 = vmatprep.mubr.msk.f32.mxu0 %vm31_vm0, %v23_v6  ;;  %v154_v15 = vld [vmem:[%s254_s2] ss:$0 sm:$0xff] }
   0x4   :  { %173 = vmatprep.subr.bf16.mxu0 %v172_v4 }
   0x5   :  { %175 = vmatpush3.bf16.msra.mxu0 %v172_v4 }
   0x6   :  { %177 = vmatprep.subr.bf16.mxu0 %v176_v7 }
   0x8   :  { %v30_v9 = vld [vmem:[#allocation2 + $0x8] sm:$0xff] }
   0x9   :  { %179 = vmatpush3.bf16.msra.mxu0 %v176_v7  ;;  %v29_v10 = vld [vmem:[#allocation2] sm:$0xff] }
   0xc   :  { %170 = vmatmul.mubr.msk.f32.vlgmr.msra.gmra.mrb[0].mxu0 %vm31_vm0, %v24_v8 }
  0xdf   :  { %v171_v11 = vpop.f32.mrb[0].mxu0 }
  0xe0   :  { %v114_v12 = vadd.f32 %v171_v11, %v30_v9  ;;  %v104_v13 = vpop.f32.mrb[1].mxu0 }
  0xe1   :  { %v113_v14 = vadd.f32 %v104_v13, %v29_v10 }
  0xe2   :  { %117 = vst.msk [vmem:[#allocation2 + $0x8] sm:$0xff] %vm20_vm1, %v114_v12 }
  0xe3   :  { %116 = vst.msk [vmem:[#allocation2] sm:$0xff] %vm20_vm1, %v113_v14 }
  0xe9   :  { %v122_v16 = vld [vmem:[#allocation2 + $0x8] sm:$0xff] }
  0xea   :  { %v121_v17 = vld [vmem:[#allocation2] sm:$0xff]  ;;  %v131_v18 = vadd.f32 %v154_v15, %v122_v16 }
  0xeb   :  { %v130_v19 = vadd.f32 %v154_v15, %v121_v17 }
  0xec   :  { %133 = vst.msk [vmem:[%s255_s3 + $0x8] sm:$0xff] %vm31_vm0, %v131_v18 }
  0xed   :  { %136 = vrot.lane.b32.xlu0 %v130_v19, %s183_s29  ;;  %132 = vst.msk [vmem:[%s255_s3] sm:$0xff] %vm31_vm0, %v130_v19 }
  0xf1   :  { %138 = vrot.lane.b32.xlu0 %v131_v18, %s183_s29 }
 0x15f   :  { %v137_v20 = vpop.permute.xlu0 %136 }
 0x160   :  { %142 = vst.msk [vmem:[%s256_s4] sm:$0xff] %vm31_vm0, %v137_v20 }
 0x163   :  { %v139_v21 = vpop.permute.xlu0 %138 }
 0x164   :  { %143 = vst.msk [vmem:[%s256_s4 + $0x8] sm:$0xff] %vm31_vm0, %v139_v21 }

// kernel: transformer_decoder_layer.7
= control target key start
LH: loop header
LB: loop body
LE: loop exit
PB: predicated region body
PF: predicated region fallthrough
CT: control target
= control target key end

     0   :  { %s1604_s30 = smov 0   ;;  %s1606_s10 = smov 0   ;;  %s1738_s0 = inlined_call_operand.vmem [shape: f32[2,8,32], index: 0, kind: input, shape index: {}]   ;;  %s1739_s1 = inlined_call_operand.vmem [shape: f32[2,8,32], index: 1, kind: input, shape index: {}]   ;;  %s1740_s2 = inlined_call_operand.vmem [shape: f32[2,8,32], index: 2, kind: input, shape index: {}]   ;;  %s1741_s3 = inlined_call_operand.vmem [shape: f32[2,1,8], index: 3, kind: input, shape index: {}]   ;;  %s1742_s4 = inlined_call_operand.vmem [shape: f32[32,32], index: 4, kind: input, shape index: {}]   ;;  %s1743_s5 = inlined_call_operand.vmem [shape: f32[1,32], index: 5, kind: input, shape index: {}]   ;;  %s1744_s6 = inlined_call_operand.vmem [shape: f32[2,8,32], index: 6, kind: input, shape index: {}]   ;;  %s1745_s7 = inlined_call_operand.vmem [shape: f32[1,32], index: 7, kind: input, shape index: {}]   ;;  %s1746_s8 = inlined_call_operand.vmem [shape: f32[1,32], index: 8, kind: input, shape index: {}]   ;;  %s1747_s9 = inlined_call_operand.vmem [shape: f32[2,8,32], index: 9, kind: output, shape index: {}]  }
   0x1   :  { %s1608_s11 = smov 0  }
   0x2 LB: > { %s31_s12 = sadd.s32 1, %s1539_s10  ;;  %p1367_p0 = scmp.ge.s32.totalorder %s1543_s11, 1  ;;  %s1543_s11 = sphi %s1608_s11, %s19_s11   ;;  %s1539_s10 = sphi %s1606_s10, %s1749_s10   ;;  %s1535_s30 = sphi %s1604_s30, %s1748_s30  }
   0x3   : > { %p33_p1 = scmp.ge.s32.totalorder %s31_s12, 2  ;;  %p345_p2 = scmp.lt.s32.totalorder %s1543_s11, 3 }
   0x5   : > { %s1751_s12 = smov (%p33_p1, %s31_s12), 0  ;;  %p346_p3 = pnand %p1367_p0, %p345_p2 }
   0x6   : > { %p403_p4 = scmp.lt.s32.totalorder (!%p346_p3), %s1535_s30, 1  ;;  %v1545_v0 = vmov (!%p346_p3), 0.0   ;;  %vm1546_vm0 = vmmov (!%p346_p3), 0   ;;  %vm446_vm1 = vcmask (!%p346_p3), 64512   ;;  %s1547_s20 = smov (!%p346_p3), 120   ;;  %v1123_v59 = vld [vmem:[%s1742_s4] sm:$0xff] (!%p346_p3) }
   0x7   : > { %349 = sbr.rel (%p346_p3) target bundleno = 1384 (0x568), region = 56  ;;  %1413 = vmatprep.subr.mxu0 (!%p346_p3), %v1545_v0  ;;  %1415 = vmatprep.mubr.msk.f32.mxu0 (!%p346_p3), %vm1546_vm0, %v1545_v0  ;;  %s1548_s21 = smov (!%p346_p3), 112   ;;  %v1124_v60 = vld [vmem:[%s1742_s4 + $0x8] sm:$0xff] (!%p346_p3)  ;;  %v1125_v62 = vld [vmem:[%s1742_s4 + $0x10] sm:$0xff] (!%p346_p3)  ;;  %v1126_v63 = vld [vmem:[%s1742_s4 + $0x18] sm:$0xff] (!%p346_p3)  ;;  %vm778_vm2 = vcmask (!%p346_p3), 130112  }
   0x8   : > { %1423 = vmatprep.subr.mxu1 (!%p346_p3), %v1545_v0  ;;  %1425 = vmatprep.mubr.msk.f32.mxu1 (!%p346_p3), %vm1546_vm0, %v1545_v0  ;;  %s1549_s22 = smov (!%p346_p3), 104   ;;  %v1465_v61 = vpack.c.bf16 (!%p346_p3), %v1124_v60, %v1123_v59  ;;  %vm949_vm3 = vcmask (!%p346_p3), 195712   ;;  %vm1120_vm4 = vcmask (!%p346_p3), 261312   ;;  %vm1134_vm5 = vcmask (!%p346_p3), 261120  }
   0xe   : > { %s1753_s30 = smov (!%p403_p4, %s1535_s30), 1 }
   0xf   : > { %s1631_s13 = sshll.u32 %s1753_s30, 3  ;;  %s420_s28 = scalar_lea.vmem %s1741_s3, %s1753_s30 }
  0x10   : > { %s413_s16 = scalar_lea.vmem %s1739_s1, %s1631_s13  ;;  %s409_s19 = scalar_lea.vmem %s1738_s0, %s1631_s13  ;;  %v1373_v11 = vld [vmem:[%s420_s28] ss:$0 sm:$0xff] }
  0x11   : > { %v437_v1 = vld [vmem:[%s413_s16] sm:$0xff]  ;;  %s417_s25 = scalar_lea.vmem %s1740_s2, %s1631_s13  ;;  %s434_s17 = scalar_lea.vmem %s1747_s9, %s1631_s13 }
  0x12   : > { %610 = vrot.lane.b32.xlu0 %v437_v1, %s1547_s20  ;;  %1414 = vmatpush3.xpose.msk.msra.mxu0 %vm446_vm1, %v437_v1  ;;  %v435_v2 = vld [vmem:[%s409_s19] sm:$0xff] }
  0x13   : > { %v436_v3 = vmul.f32 0.35355338, %v435_v2  ;;  %782 = vrot.lane.b32.xlu1 %v437_v1, %s1548_s21  ;;  %1418 = vmatprep.subr.mxu0 %v1545_v0  ;;  %v438_v4 = vld [vmem:[%s417_s25] sm:$0xff]  ;;  %s427_s25 = scalar_lea.vmem %s1744_s6, %s1631_s13 }
  0x15   : > { %1416 = vmatmul.mubr.msk.f32.vlgmr.msra.gmra.mrb[0].mxu0 %vm446_vm1, %v436_v3 }
  0x16   : > { %608 = vrot.lane.b32.xlu0 %v436_v3, %s1547_s20  ;;  %1420 = vmatprep.mubr.msk.f32.mxu0 %vm1546_vm0, %v1545_v0 }
  0x17   : > { %780 = vrot.lane.b32.xlu1 %v436_v3, %s1548_s21  ;;  %1419 = vmatpush3.msra.mxu0 %v438_v4 }
  0x18   : > { %1428 = vmatprep.subr.mxu0 %v1545_v0 }
  0x1a   : > { %953 = vrot.lane.b32.xlu0 %v437_v1, %s1549_s22 }
  0x1b   : > { %951 = vrot.lane.b32.xlu1 %v436_v3, %s1549_s22  ;;  %v1468_v3 = vpack.c.bf16 %v1126_v63, %v1125_v62 }
  0x1f   : > { %696 = vrot.lane.b32.xlu1 %v438_v4, %s1547_s20  ;;  %s1551_s20 = smov 8  }
  0x84   : > { %v611_v5 = vpop.permute.xlu0 %610 }
  0x85   : > { %1424 = vmatpush3.xpose.msk.msra.mxu1 %vm446_vm1, %v611_v5  ;;  %v783_v6 = vpop.permute.xlu1 %782 }
  0x86   : > { %1433 = vmatprep.subr.mxu1 %v1545_v0 }
  0x88   : > { %v609_v7 = vpop.permute.xlu0 %608 }
  0x89   : > { %1426 = vmatmul.mubr.msk.f32.vlgmr.msra.gmra.mrb[0].mxu1 %vm446_vm1, %v609_v7  ;;  %v781_v8 = vpop.permute.xlu1 %780 }
  0x8a   : > { %1434 = vmatpush3.xpose.msk.msra.mxu1 %vm446_vm1, %v783_v6  ;;  %1435 = vmatprep.mubr.msk.f32.mxu1 %vm1546_vm0, %v1545_v0 }
  0x8b   : > { %1443 = vmatprep.subr.mxu1 %v1545_v0 }
  0x8c   : > { %v954_v9 = vpop.permute.xlu0 %953 }
  0x8d   : > { %1436 = vmatmul.mubr.msk.f32.vlgmr.msra.gmra.mrb[2].mxu1 %vm446_vm1, %v781_v8  ;;  %v952_v10 = vpop.permute.xlu1 %951 }
  0x8e   : > { %1444 = vmatpush3.xpose.msk.msra.mxu1 %vm446_vm1, %v954_v9  ;;  %1445 = vmatprep.mubr.msk.f32.mxu1 %vm1546_vm0, %v1545_v0 }
  0x91   : > { %1446 = vmatmul.mubr.msk.f32.vlgmr.msra.gmra.mrb[4].mxu1 %vm446_vm1, %v952_v10  ;;  %v697_v31 = vpop.permute.xlu1 %696 }
  0x92   : > { %1461 = vmatprep.mubr.msk.f32.mxu1 %vm1546_vm0, %v1545_v0 }
  0xe8   : > { %v519_v12 = vpop.f32.mrb[0].mxu0 }
  0xe9   : > { %v520_v13 = vadd.f32 %v1373_v11, %v519_v12  ;;  %v1417_v14 = vpop.f32.mrb[1].mxu0 }
  0xeb   : > { %v523_v15 = vsel %vm446_vm1, %v520_v13, -inf }
  0xec   : > { %524 = vmax.xlane.f32.xlu0 %v523_v15 }
 0x15c   : > { %v682_v16 = vpop.f32.mrb[0].mxu1 }
 0x15d   : > { %v683_v17 = vadd.f32 %v1373_v11, %v682_v16  ;;  %v1427_v18 = vpop.f32.mrb[1].mxu1 }
 0x15e   : > { %v1386_v18 = vld [vmem:[%s1743_s5] ss:$0 sm:$0xff] }
 0x15f   : > { %v686_v19 = vsel %vm446_vm1, %v683_v17, -inf }
 0x160   : > { %687 = vmax.xlane.f32.xlu1 %v686_v19  ;;  %v854_v20 = vpop.f32.mrb[2].mxu1 }
 0x161   : > { %v855_v21 = vadd.f32 %v1373_v11, %v854_v20  ;;  %v1437_v22 = vpop.f32.mrb[3].mxu1  ;;  %v1208_v20 = vld [vmem:[%s427_s25] sm:$0xff] }
 0x163   : > { %v858_v23 = vsel %vm446_vm1, %v855_v21, -inf }
 0x164   : > { %v1025_v24 = vpop.f32.mrb[4].mxu1  ;;  %859 = vmax.xlane.f32.xlu0 %v858_v23 }
 0x165   : > { %v1026_v25 = vadd.f32 %v1373_v11, %v1025_v24  ;;  %v1447_v26 = vpop.f32.mrb[5].mxu1 }
 0x167   : > { %v1029_v27 = vsel %vm446_vm1, %v1026_v25, -inf }
 0x168   : > { %1030 = vmax.xlane.f32.xlu0 %v1029_v27 }
 0x171   : > { %1038 = vrot.lane.b32.xlu1 %v438_v4, %s1549_s22  ;;  %s1553_s22 = smov 24  }
 0x179   : > { %v525_v28 = vpop.xlane.xlu0 %524 }
 0x17a   : > { %v526_v29 = vsub.f32 %v520_v13, %v525_v28 }
 0x17c   : > { %v527_v30 = vmul.f32 1.442695, %v526_v29 }
 0x17e   : > { %1503 = vpow2.f32 %v527_v30  ;;  %867 = vrot.lane.b32.xlu0 %v438_v4, %s1548_s21  ;;  %s1552_s21 = smov 16  }
 0x188   : > { %v1504_v32 = vpop.eup %1503 }
 0x189   : > { %1421 = vmatmul.mubr.msk.f32.vlgmr.msra.gmra.mrb[2].mxu0 %vm446_vm1, %v1504_v32  ;;  %v529_v47 = vsel %vm446_vm1, %v1504_v32, 0.0 }
 0x18a   : > { %1429 = vmatpush3.msra.mxu0 %v697_v31  ;;  %1430 = vmatprep.mubr.msk.f32.mxu0 %vm1546_vm0, %v1545_v0 }
 0x18b   : > { %1438 = vmatprep.subr.mxu0 %v1545_v0 }
 0x1ed   : > { %v688_v33 = vpop.xlane.xlu1 %687 }
 0x1ee   : > { %v689_v34 = vsub.f32 %v683_v17, %v688_v33 }
 0x1f0   : > { %v690_v35 = vmul.f32 1.442695, %v689_v34  ;;  %v1388_v34 = vld [vmem:[%s1745_s7] ss:$0 sm:$0xff] }
 0x1f1   : > { %v860_v36 = vpop.xlane.xlu0 %859  ;;  %v1039_v45 = vpop.permute.xlu1 %1038 }
 0x1f2   : > { %1505 = vpow2.f32 %v690_v35  ;;  %v861_v37 = vsub.f32 %v855_v21, %v860_v36  ;;  %v1389_v36 = vld [vmem:[%s1746_s8] ss:$0 sm:$0xff] }
 0x1f4   : > { %v862_v38 = vmul.f32 1.442695, %v861_v37 }
 0x1f5   : > { %v1031_v39 = vpop.xlane.xlu0 %1030 }
 0x1f6   : > { %1507 = vpow2.f32 %v862_v38  ;;  %v1032_v40 = vsub.f32 %v1026_v25, %v1031_v39 }
 0x1f8   : > { %v1033_v41 = vmul.f32 1.442695, %v1032_v40 }
 0x1f9   : > { %v868_v42 = vpop.permute.xlu0 %867 }
 0x1fa   : > { %1509 = vpow2.f32 %v1033_v41 }
 0x1fc   : > { %v1506_v43 = vpop.eup %1505 }
 0x1fd   : > { %1431 = vmatmul.mubr.msk.f32.vlgmr.msra.gmra.mrb[4].mxu0 %vm446_vm1, %v1506_v43  ;;  %v692_v44 = vsel %vm446_vm1, %v1506_v43, 0.0 }
 0x1fe   : > { %1439 = vmatpush3.msra.mxu0 %v868_v42  ;;  %693 = vadd.xlane.f32.xlu1 %v692_v44 }
 0x1ff   : > { %1440 = vmatprep.mubr.msk.f32.mxu0 %vm1546_vm0, %v1545_v0  ;;  %1448 = vmatprep.subr.mxu0 %v1545_v0 }
 0x200   : > { %v1508_v46 = vpop.eup %1507 }
 0x201   : > { %1441 = vmatmul.mubr.msk.f32.vlgmr.msra.gmra.mrb[6].mxu0 %vm446_vm1, %v1508_v46  ;;  %v864_v48 = vsel %vm446_vm1, %v1508_v46, 0.0 }
 0x202   : > { %1449 = vmatpush3.msra.mxu0 %v1039_v45  ;;  %530 = vadd.xlane.f32.xlu1 %v529_v47 }
 0x203   : > { %865 = vadd.xlane.f32.xlu0 %v864_v48  ;;  %1450 = vmatprep.mubr.msk.f32.mxu0 %vm1546_vm0, %v1545_v0  ;;  %v1550_v0 = vmov 0.0|0.0  }
 0x204   : > { %v1510_v49 = vpop.eup %1509  ;;  %1464 = vmatprep.subr.bf16.mxu1 %v1550_v0 }
 0x205   : > { %1451 = vmatmul.mubr.msk.f32.vlgmr.msra.gmra.mrb[8].mxu0 %vm446_vm1, %v1510_v49  ;;  %v1035_v50 = vsel %vm446_vm1, %v1510_v49, 0.0  ;;  %1466 = vmatpush3.bf16.msra.mxu1 %v1465_v61 }
 0x206   : > { %1467 = vmatprep.subr.bf16.mxu1 %v1550_v0 }
 0x207   : > { %1036 = vadd.xlane.f32.xlu0 %v1035_v50 }
 0x209   : > { %1469 = vmatpush3.bf16.msra.mxu1 %v1468_v3 }
 0x25c   : > { %v601_v51 = vpop.f32.mrb[2].mxu0 }
 0x25d   : > { %v1422_v52 = vpop.f32.mrb[3].mxu0 }
 0x28b   : > { %v694_v53 = vpop.xlane.xlu1 %693 }
 0x28f   : > { %v531_v54 = vpop.xlane.xlu1 %530 }
 0x290   : > { %1511 = vrcp.f32 %v531_v54  ;;  %v866_v57 = vpop.xlane.xlu0 %865 }
 0x291   : > { %1513 = vrcp.f32 %v694_v53 }
 0x292   : > { %1515 = vrcp.f32 %v866_v57 }
 0x294   : > { %v1037_v58 = vpop.xlane.xlu0 %1036 }
 0x295   : > { %1517 = vrcp.f32 %v1037_v58 }
 0x29a   : > { %v1512_v55 = vpop.eup %1511 }
 0x29b   : > { %v606_v56 = vmul.f32 %v1512_v55, %v601_v51  ;;  %v1514_v1 = vpop.eup %1513 }
 0x29c   : > { %v1516_v6 = vpop.eup %1515 }
 0x29d   : > { %607 = vst.msk [vmem:[#allocation2] sm:$0xff] %vm446_vm1, %v606_v56 }
 0x29f   : > { %v1518_v10 = vpop.eup %1517 }
 0x2d0   : > { %v768_v2 = vpop.f32.mrb[4].mxu0 }
 0x2d1   : > { %v773_v4 = vmul.f32 %v1514_v1, %v768_v2  ;;  %v1432_v5 = vpop.f32.mrb[5].mxu0 }
 0x2d3   : > { %775 = vrot.lane.b32.xlu0 %v773_v4, %s1551_s20 }
 0x2d4   : > { %v939_v7 = vpop.f32.mrb[6].mxu0 }
 0x2d5   : > { %v944_v8 = vmul.f32 %v1516_v6, %v939_v7  ;;  %v1442_v9 = vpop.f32.mrb[7].mxu0 }
 0x2d7   : > { %946 = vrot.lane.b32.xlu1 %v944_v8, %s1552_s21 }
 0x2d8   : > { %v1110_v11 = vpop.f32.mrb[8].mxu0 }
 0x2d9   : > { %v1115_v12 = vmul.f32 %v1518_v10, %v1110_v11  ;;  %v1452_v13 = vpop.f32.mrb[9].mxu0 }
 0x2db   : > { %1117 = vrot.lane.b32.xlu1 %v1115_v12, %s1553_s22 }
 0x345   : > { %v776_v14 = vpop.permute.xlu0 %775 }
 0x346   : > { %779 = vst.msk [vmem:[#allocation2] sm:$0xff] %vm778_vm2, %v776_v14 }
 0x349   : > { %v947_v15 = vpop.permute.xlu1 %946 }
 0x34a   : > { %950 = vst.msk [vmem:[#allocation2] sm:$0xff] %vm949_vm3, %v947_v15 }
 0x34d   : > { %v1118_v16 = vpop.permute.xlu1 %1117 }
 0x34e   : > { %1121 = vst.msk [vmem:[#allocation2] sm:$0xff] %vm1120_vm4, %v1118_v16 }
 0x355   : > { %v1122_v17 = vld [vmem:[#allocation2] sm:$0xff] }
 0x356   : > { %1462 = vmatmul.mubr.msk.f32.vlgmr.msra.gmra.mrb[6].mxu1 %vm1134_vm5, %v1122_v17 }
 0x429   : > { %v1204_v19 = vpop.f32.mrb[6].mxu1 }
 0x42a   : > { %v1205_v21 = vadd.f32 %v1386_v18, %v1204_v19  ;;  %v1463_v22 = vpop.f32.mrb[7].mxu1 }
 0x42c   : > { %v1209_v23 = vadd.f32 %v1208_v20, %v1205_v21 }
 0x42e   : > { %v1210_v24 = vsel %vm1134_vm5, %v1209_v23, 0.0 }
 0x42f   : > { %1211 = vadd.xlane.f32.xlu0 %v1210_v24 }
 0x4bc   : > { %v1212_v25 = vpop.xlane.xlu0 %1211 }
 0x4bd   : > { %v1214_v26 = vmul.f32 0.03125, %v1212_v25 }
 0x4bf   : > { %v1215_v27 = vsub.f32 %v1209_v23, %v1214_v26 }
 0x4c1   : > { %v1216_v28 = vmul.f32 %v1215_v27, %v1215_v27 }
 0x4c3   : > { %v1217_v29 = vsel %vm1134_vm5, %v1216_v28, 0.0 }
 0x4c4   : > { %1218 = vadd.xlane.f32.xlu1 %v1217_v29 }
 0x551   : > { %v1219_v30 = vpop.xlane.xlu1 %1218 }
 0x552   : > { %v1220_v31 = vmul.f32 0.03125, %v1219_v30 }
 0x554   : > { %v1221_v32 = vadd.f32 1e-12, %v1220_v31 }
 0x556   : > { %1519 = vrsqrt.f32 %v1221_v32 }
 0x560   : > { %v1520_v33 = vpop.eup %1519 }
 0x561   : > { %v1223_v35 = vmul.f32 %v1520_v33, %v1215_v27 }
 0x563   : > { %v1231_v37 = vmul.f32 %v1388_v34, %v1223_v35 }
 0x565   : > { %v1239_v38 = vadd.f32 %v1389_v36, %v1231_v37 }
 0x567   : > { %1240 = vst.msk [vmem:[%s434_s17] sm:$0xff] %vm1134_vm5, %v1239_v38 }
 0x568 PF: > { %s19_s11 = sadd.s32 1, %s1543_s11   ;;  %s1748_s30 = smov %s1539_s10 }
 0x569   : > { %p16_p5 = scmp.ge.s32.totalorder %s19_s11, 4   ;;  %s1749_s10 = smov %s1751_s12 }
 0x56b   :  { %18 = sbr.rel (!%p16_p5) target bundleno = 2 (0x2), region = 98 }

// kernel: transformer_decoder_layer.11
= control target key start
LH: loop header
LB: loop body
LE: loop exit
PB: predicated region body
PF: predicated region fallthrough
CT: control target
= control target key end

     0   :  { %vm31_vm0 = vcmask 261120   ;;  %s554_s0 = inlined_call_operand.vmem [shape: f32[16,32], index: 0, kind: input, shape index: {}]   ;;  %s555_s1 = inlined_call_operand.vmem [shape: f32[32,64], index: 1, kind: input, shape index: {}]   ;;  %s556_s2 = inlined_call_operand.vmem [shape: f32[1,64], index: 2, kind: input, shape index: {}]   ;;  %s557_s3 = inlined_call_operand.vmem [shape: f32[64,32], index: 3, kind: input, shape index: {}]   ;;  %s558_s4 = inlined_call_operand.vmem [shape: f32[1,32], index: 4, kind: input, shape index: {}]   ;;  %s559_s5 = inlined_call_operand.vmem [shape: f32[1,32], index: 5, kind: input, shape index: {}]   ;;  %s560_s6 = inlined_call_operand.vmem [shape: f32[1,32], index: 6, kind: input, shape index: {}]   ;;  %s561_s7 = inlined_call_operand.hbm [shape: f32[16,32], index: 7, kind: output, shape index: {}]  }
   0x1   :  { %v36_v0 = vld [vmem:[%s555_s1] sm:$0xff]  ;;  %v37_v1 = vld [vmem:[%s555_s1 + $0x8] sm:$0xff]  ;;  %v38_v2 = vld [vmem:[%s555_s1 + $0x10] sm:$0xff] }
   0x2   :  { %v368_v3 = vpack.c.bf16 %v37_v1, %v36_v0  ;;  %v39_v4 = vld [vmem:[%s555_s1 + $0x18] sm:$0xff]  ;;  %v487_v5 = vld [vmem:[%s554_s0] sm:$0xff] }
   0x3   :  { %v372_v6 = vpack.c.bf16 %v39_v4, %v38_v2  ;;  %346 = vmatprep.mubr.msk.f32.mxu0 %vm31_vm0, %v487_v5 }
   0x4   :  { %12 = vsyncpa [#allocation4], 0  ;;  %369 = vmatprep.subr.bf16.mxu0 %v368_v3  ;;  %v35_v7 = vld [vmem:[%s554_s0 + $0x8] sm:$0xff]  ;;  %v40_v8 = vld [vmem:[%s557_s3] sm:$0xff]  ;;  %v428_v20 = vmov 0.0   ;;  %vm149_vm1 = vcmask 523264  }
   0x5   :  { %371 = vmatpush3.bf16.msra.mxu0 %v368_v3  ;;  %v41_v9 = vld [vmem:[%s557_s3 + $0x8] sm:$0xff]  ;;  %v42_v11 = vld [vmem:[%s557_s3 + $0x10] sm:$0xff]  ;;  %v43_v12 = vld [vmem:[%s557_s3 + $0x18] sm:$0xff]  ;;  %33 = vst.msk [vmem:[#allocation2 + $0x8] sm:$0xff] %vm31_vm0, %v428_v20  ;;  %s429_s9 = smov [#allocation3]  }
   0x6   :  { %373 = vmatprep.subr.bf16.mxu0 %v372_v6  ;;  %v376_v10 = vpack.c.bf16 %v41_v9, %v40_v8  ;;  %v380_v13 = vpack.c.bf16 %v43_v12, %v42_v11  ;;  %v44_v14 = vld [vmem:[%s557_s3 + $0x20] sm:$0xff]  ;;  %v45_v15 = vld [vmem:[%s557_s3 + $0x28] sm:$0xff]  ;;  %v46_v17 = vld [vmem:[%s557_s3 + $0x30] sm:$0xff]  ;;  %32 = vst.msk [vmem:[#allocation2] sm:$0xff] %vm31_vm0, %v428_v20  ;;  %s303_s10 = sshll.u32 %s429_s9, 4  ;;  %s304_s10 = int_to_ptr.vmem [resolvable:$true] %s303_s10 }
   0x7   :  { %v384_v16 = vpack.c.bf16 %v45_v15, %v44_v14  ;;  %v47_v18 = vld [vmem:[%s557_s3 + $0x38] sm:$0xff]  ;;  %v314_v21 = vld [vmem:[%s556_s2] ss:$0 sm:$0xff]  ;;  %s404_s11 = scalar_lea.vmem %s304_s10, 256  ;;  %p409_p1 = scmp.lt.s32.totalorder %s304_s10, %s304_s10 }
   0x8   :  { %377 = vmatprep.subr.bf16.mxu1 %v376_v10  ;;  %v388_v19 = vpack.c.bf16 %v47_v18, %v46_v17  ;;  %v319_v42 = vld [vmem:[%s558_s4] ss:$0 sm:$0xff]  ;;  %p405_p0 = scmp.ne.s32.totalorder %s304_s10, %s404_s11  ;;  %p410_p2 = scmp.lt.s32.totalorder %s404_s11, %s404_s11 }
   0x9   :  { %375 = vmatpush3.bf16.msra.mxu0 %v372_v6  ;;  %379 = vmatpush3.bf16.msra.mxu1 %v376_v10  ;;  %v320_v4 = vld [vmem:[%s559_s5] ss:$0 sm:$0xff] }
   0xa   :  { %381 = vmatprep.subr.bf16.mxu1 %v380_v13  ;;  %v321_v6 = vld [vmem:[%s560_s6] ss:$0 sm:$0xff]  ;;  %p411_p3 = por %p410_p2, %p409_p1 }
   0xc   :  { %347 = vmatmul.mubr.msk.f32.vlgmr.msra.gmra.mrb[0].mxu0 %vm31_vm0, %v35_v7  ;;  %v148_v36 = vld [vmem:[#allocation2 + $0x8] sm:$0xff]  ;;  %p412_p4 = pnand %p411_p3, %p405_p0 }
   0xd   :  { %383 = vmatpush3.bf16.msra.mxu1 %v380_v13  ;;  %v147_v37 = vld [vmem:[#allocation2] sm:$0xff] }
   0xe   :  { %385 = vmatprep.subr.bf16.mxu1 %v384_v16 }
  0x11   :  { %387 = vmatpush3.bf16.msra.mxu1 %v384_v16 }
  0x12   :  { %389 = vmatprep.subr.bf16.mxu1 %v388_v19 }
  0x15   :  { %391 = vmatpush3.bf16.msra.mxu1 %v388_v19 }
  0xdf   :  { %v348_v22 = vpop.f32.mrb[0].mxu0 }
  0xe0   :  { %v134_v23 = vadd.f32 %v348_v22, %v314_v21  ;;  %v128_v24 = vpop.f32.mrb[1].mxu0 }
  0xe1   :  { %v129_v25 = vadd.f32 %v314_v21, %v128_v24 }
  0xe2   :  { %v140_v26 = vmul.f32 0.70710677, %v134_v23  ;;  %v138_v33 = vmul.f32 0.5, %v134_v23 }
  0xe3   :  { %v139_v27 = vmul.f32 0.70710677, %v129_v25  ;;  %v137_v31 = vmul.f32 0.5, %v129_v25 }
  0xe4   :  { %396 = verf.f32 %v140_v26 }
  0xe5   :  { %398 = verf.f32 %v139_v27 }
  0xee   :  { %v397_v28 = vpop.eup %396 }
  0xef   :  { %v399_v29 = vpop.eup %398  ;;  %v144_v30 = vadd.f32 1.0, %v397_v28 }
  0xf0   :  { %v143_v32 = vadd.f32 1.0, %v399_v29 }
  0xf1   :  { %v146_v35 = vmul.f32 %v144_v30, %v138_v33 }
  0xf2   :  { %v145_v34 = vmul.f32 %v143_v32, %v137_v31 }
  0xf4   :  { %365 = vmatprep.mubr.msk.f32.mxu1 %vm149_vm1, %v145_v34 }
  0xf5   :  { %366 = vmatmul.mubr.msk.f32.vlgmr.msra.gmra.mrb[0].mxu1 %vm149_vm1, %v146_v35 }
 0x1c8   :  { %v367_v38 = vpop.f32.mrb[0].mxu1 }
 0x1c9   :  { %v232_v39 = vadd.f32 %v367_v38, %v148_v36  ;;  %v222_v40 = vpop.f32.mrb[1].mxu1 }
 0x1ca   :  { %v231_v41 = vadd.f32 %v222_v40, %v147_v37 }
 0x1cb   :  { %234 = vst.msk [vmem:[#allocation2 + $0x8] sm:$0xff] %vm31_vm0, %v232_v39 }
 0x1cc   :  { %233 = vst.msk [vmem:[#allocation2] sm:$0xff] %vm31_vm0, %v231_v41 }
 0x1d2   :  { %v239_v43 = vld [vmem:[#allocation2 + $0x8] sm:$0xff] }
 0x1d3   :  { %v238_v44 = vld [vmem:[#allocation2] sm:$0xff]  ;;  %v248_v46 = vadd.f32 %v319_v42, %v239_v43 }
 0x1d4   :  { %v247_v45 = vadd.f32 %v319_v42, %v238_v44 }
 0x1d5   :  { %v250_v49 = vadd.f32 %v248_v46, %v35_v7 }
 0x1d6   :  { %v249_v47 = vadd.f32 %v247_v45, %v487_v5 }
 0x1d7   :  { %v254_v50 = vsel %vm31_vm0, %v250_v49, 0.0 }
 0x1d8   :  { %v251_v48 = vsel %vm31_vm0, %v249_v47, 0.0 }
 0x1d9   :  { %252 = vadd.xlane.f32.xlu0 %v251_v48 }
 0x1dd   :  { %255 = vadd.xlane.f32.xlu0 %v254_v50 }
 0x266   :  { %v253_v51 = vpop.xlane.xlu0 %252 }
 0x267   :  { %v258_v52 = vmul.f32 0.03125, %v253_v51 }
 0x269   :  { %v260_v53 = vsub.f32 %v249_v47, %v258_v52 }
 0x26a   :  { %v256_v54 = vpop.xlane.xlu0 %255 }
 0x26b   :  { %v259_v55 = vmul.f32 0.03125, %v256_v54  ;;  %v262_v56 = vmul.f32 %v260_v53, %v260_v53 }
 0x26d   :  { %v261_v57 = vsub.f32 %v250_v49, %v259_v55  ;;  %v264_v58 = vsel %vm31_vm0, %v262_v56, 0.0 }
 0x26e   :  { %265 = vadd.xlane.f32.xlu1 %v264_v58 }
 0x26f   :  { %v263_v59 = vmul.f32 %v261_v57, %v261_v57 }
 0x271   :  { %v267_v60 = vsel %vm31_vm0, %v263_v59, 0.0 }
 0x272   :  { %268 = vadd.xlane.f32.xlu1 %v267_v60 }
 0x2fb   :  { %v266_v61 = vpop.xlane.xlu1 %265 }
 0x2fc   :  { %v270_v62 = vmul.f32 0.03125, %v266_v61 }
 0x2fe   :  { %v272_v63 = vadd.f32 1e-12, %v270_v62 }
 0x2ff   :  { %v269_v0 = vpop.xlane.xlu1 %268 }
 0x300   :  { %400 = vrsqrt.f32 %v272_v63  ;;  %v271_v1 = vmul.f32 0.03125, %v269_v0 }
 0x302   :  { %v273_v2 = vadd.f32 1e-12, %v271_v1 }
 0x304   :  { %402 = vrsqrt.f32 %v273_v2 }
 0x30a   :  { %v401_v3 = vpop.eup %400 }
 0x30b   :  { %v276_v5 = vmul.f32 %v401_v3, %v260_v53 }
 0x30d   :  { %v285_v7 = vmul.f32 %v320_v4, %v276_v5 }
 0x30e   :  { %v403_v8 = vpop.eup %402 }
 0x30f   :  { %v277_v9 = vmul.f32 %v403_v8, %v261_v57  ;;  %v294_v10 = vadd.f32 %v321_v6, %v285_v7 }
 0x311   :  { %v286_v11 = vmul.f32 %v320_v4, %v277_v9  ;;  %296 = vst.msk [vmem:[#allocation3] sm:$0xff] %vm31_vm0, %v294_v10 }
 0x313   :  { %v295_v12 = vadd.f32 %v321_v6, %v286_v11 }
 0x315   :  { %297 = vst.msk [vmem:[#allocation3 + $0x8] sm:$0xff] %vm31_vm0, %v295_v12 }
 0x316   :  { %415 = shalt.err (!%p412_p4)
}
 0x317   :  { %s416_s12 = scalar_lea.hbm %s561_s7, 256 }
 0x318   :  { %p417_p5 = scmp.ne.s32.totalorder %s561_s7, %s416_s12  ;;  %p420_p6 = scmp.lt.u32.totalorder %s416_s12, %s561_s7 }
 0x31a   :  { %p422_p7 = pnand %p420_p6, %p417_p5 }
 0x31c   :  { %425 = shalt.err (!%p422_p7)
}
 0x31d   :  { %s430_s16 = smov 128   ;;  %s431_s17 = smov 8  }
 0x31e   :  { %309 = dma.vmem_to_hbm [thread:$0]  %s304_s10, 256, %s561_s7, [#allocation4], %s430_s16, %s430_s16, %s431_s17  }
 0x31f   :  { %426 = dma.done.wait [#allocation4], 256  }
 0x320   :  { %427 = vsyncadd [#allocation4], 4294967040 }
 0x321   :  { %313 = vsyncpa [#allocation4], 1 }

</bundles_post_ra>
